<compile_context>
chip_gen: v5e
topology: v5e:2x2
jax: 0.10.0
libtpu: 0.0.40
codegen_flags: <defaults>
</compile_context>

<pallas_src>
import jax
import jax.numpy as jnp
from jax import lax
from jax.experimental import pallas as pl
from jax.experimental.pallas import tpu as pltpu


def _round_up(x, m):
    return (x + m - 1) // m * m


# ---------------------------------------------------------------------------
# Wrapper-side layout plumbing: im2col fused with the 2x2/2 max-pool grouping,
# transposed so the kernel's dot output is lane-dense.
# ---------------------------------------------------------------------------
def _pool_patches_t(a, k, out_dtype=jnp.bfloat16):
    """a: (B, H, W, Cin) NHWC ->  P: (4, k*k*Cin, B*Hp*Wp) with
       P[dh*2+dw, (kh*k+kw)*Cin+ci, b*Hp*Wp + ph*Wp + pw]
         = a[b, 2*ph+dh+kh, 2*pw+dw+kw, ci]
    Column m is the conv patch for pooled position (b, ph, pw); axis 0
    enumerates the four conv outputs inside that 2x2 pooling window."""
    B, H, W, Cin = a.shape
    Hp, Wp = (H - k + 1) // 2, (W - k + 1) // 2
    R = Hp * Wp
    groups = []
    for dh in range(2):
        for dw in range(2):
            taps = []
            for kh in range(k):
                for kw in range(k):
                    taps.append(a[:, dh + kh: dh + kh + 2 * Hp: 2,
                                  dw + kw: dw + kw + 2 * Wp: 2, :])
            pq = jnp.stack(taps, axis=3)               # (B, Hp, Wp, k*k, Cin)
            groups.append(pq.reshape(B, R, k * k * Cin))
    P = jnp.stack(groups, axis=0).reshape(4, B * R, k * k * Cin)
    return P.transpose(0, 2, 1).astype(out_dtype)      # (4, K, B*R)


# ---------------------------------------------------------------------------
# Kernel 1: conv (valid, stride 1) + 2x2 max-pool + bias + ReLU, batch-tiled.
#   p_ref : (4, K, TM)    bf16 pool-grouped im2col patches (lane-dense)
#   w_ref : (Cout, K)     bf16 weights (resident)
#   b_ref : (Cout, 1)     f32  bias    (resident)
#   o_ref : (Cout, TM)    f32  pooled + ReLU'd activations (lane-dense store)
# Four wide MXU dots per step, pool fused as a running max, bias added after
# the max (per-channel bias commutes with max), ReLU last.
# ---------------------------------------------------------------------------
def _conv_pool_relu_t_kernel(p_ref, w_ref, b_ref, o_ref):
    w = w_ref[...]
    acc = jnp.dot(w, p_ref[0], preferred_element_type=jnp.float32)
    for q in range(1, 4):
        acc = jnp.maximum(
            acc, jnp.dot(w, p_ref[q], preferred_element_type=jnp.float32))
    o_ref[...] = jnp.maximum(acc + b_ref[...], 0.0).astype(o_ref.dtype)


def _conv_pool_relu_t(patches_t, w_t, b, *, tile_cols):
    _, K, M = patches_t.shape
    Cout = w_t.shape[0]
    assert M % tile_cols == 0 and tile_cols % 128 == 0
    return pl.pallas_call(
        _conv_pool_relu_t_kernel,
        out_shape=jax.ShapeDtypeStruct((Cout, M), jnp.float32),
        grid=(M // tile_cols,),
        in_specs=[
            pl.BlockSpec((4, K, tile_cols), lambda i: (0, 0, i)),
            pl.BlockSpec((Cout, K), lambda i: (0, 0)),      # resident weights
            pl.BlockSpec((Cout, 1), lambda i: (0, 0)),      # resident bias
        ],
        out_specs=pl.BlockSpec((Cout, tile_cols), lambda i: (0, i)),
        compiler_params=pltpu.CompilerParams(
            dimension_semantics=("parallel",)),
    )(patches_t, w_t, b)


# ---------------------------------------------------------------------------
# Kernel 2: fused classifier head  fc1 + ReLU + fc2 + log_softmax.
# Gridded over row tiles; the (B, 64) hidden activation lives only in vregs.
# ---------------------------------------------------------------------------
def _mlp_head_kernel(x_ref, w1_ref, b1_ref, w2_ref, b2_ref, o_ref):
    h = jnp.dot(x_ref[...].astype(jnp.bfloat16), w1_ref[...],
                preferred_element_type=jnp.float32)
    h = jnp.maximum(h + b1_ref[...], 0.0)
    # TODO(synk): F.dropout is identity here (eval-mode inference).
    y = jnp.dot(h.astype(jnp.bfloat16), w2_ref[...],
                preferred_element_type=jnp.float32) + b2_ref[...]
    m = jnp.max(y, axis=-1, keepdims=True)
    lse = jnp.log(jnp.sum(jnp.exp(y - m), axis=-1, keepdims=True))
    o_ref[...] = (y - m - lse).astype(o_ref.dtype)


def _mlp_head(x, w1, b1, w2, b2, *, block_rows=256):
    B, K = x.shape
    N1, N2 = w1.shape[1], w2.shape[1]
    tm = min(block_rows, _round_up(B, 8))
    Bp = _round_up(B, tm)
    xp = jnp.pad(x, ((0, Bp - B), (0, 0))) if Bp != B else x
    out = pl.pallas_call(
        _mlp_head_kernel,
        out_shape=jax.ShapeDtypeStruct((Bp, N2), jnp.float32),
        grid=(Bp // tm,),
        in_specs=[
            pl.BlockSpec((tm, K), lambda i: (i, 0)),
            pl.BlockSpec((K, N1), lambda i: (0, 0)),
            pl.BlockSpec((1, N1), lambda i: (0, 0)),
            pl.BlockSpec((N1, N2), lambda i: (0, 0)),
            pl.BlockSpec((1, N2), lambda i: (0, 0)),
        ],
        out_specs=pl.BlockSpec((tm, N2), lambda i: (i, 0)),
        compiler_params=pltpu.CompilerParams(
            dimension_semantics=("parallel",)),
    )(xp, w1, b1, w2, b2)
    return out[:B] if Bp != B else out


# ---------------------------------------------------------------------------
# Parameter preparation (hoisted out of the forward pass, done once).
# ---------------------------------------------------------------------------
def prepare_params(p):
    # Conv weights: (Cout, Cin, kh, kw) -> (Cout, (kh*k+kw)*Cin + ci), bf16.
    c1w = jnp.transpose(p["conv1_w"], (0, 2, 3, 1)).reshape(10, 25)
    c2w = jnp.transpose(p["conv2_w"], (0, 2, 3, 1)).reshape(20, 250)
    # fc1 columns permuted so the NHWC (h, w, c) flatten matches PyTorch's
    # NCHW view(-1, 320) exactly; hidden padded 50 -> 64 with zeros (exact).
    w1 = jnp.transpose(p["fc1_w"].reshape(50, 20, 4, 4),
                       (2, 3, 1, 0)).reshape(320, 50)
    w1 = jnp.pad(w1, ((0, 0), (0, 14)))
    b1 = jnp.pad(p["fc1_b"], ((0, 14),))
    w2 = jnp.pad(p["fc2_w"].T, ((0, 14), (0, 0)))        # (64, 10)
    return {
        "conv1_w": c1w.astype(jnp.bfloat16),
        "conv1_b": p["conv1_b"].reshape(10, 1),
        "conv2_w": c2w.astype(jnp.bfloat16),
        "conv2_b": p["conv2_b"].reshape(20, 1),
        "fc1_w": w1.astype(jnp.bfloat16),
        "fc1_b": b1.reshape(1, 64),
        "fc2_w": w2.astype(jnp.bfloat16),
        "fc2_b": p["fc2_b"].reshape(1, 10),
    }


# ---------------------------------------------------------------------------
# Full forward pass (equivalent to Net.forward in eval mode).
# ---------------------------------------------------------------------------
def net_forward(x_nchw, kp, *, tile_imgs=8, head_rows=256):
    assert tile_imgs % 8 == 0          # keeps every block lane-dim a mult. of 128
    x = jnp.transpose(x_nchw, (0, 2, 3, 1))              # NCHW -> NHWC
    B = x.shape[0]
    Bp = _round_up(B, tile_imgs)
    if Bp != B:
        x = jnp.pad(x, ((0, Bp - B), (0, 0), (0, 0), (0, 0)))

    # conv1 + pool + ReLU: out (10, Bp*144), 1152-wide lane-dense tiles.
    p1 = _pool_patches_t(x, 5)                            # (4, 25, Bp*144)
    y1 = _conv_pool_relu_t(p1, kp["conv1_w"], kp["conv1_b"],
                           tile_cols=tile_imgs * 144)
    y1 = y1.reshape(10, Bp, 12, 12).transpose(1, 2, 3, 0)  # (Bp,12,12,10) NHWC

    # TODO(synk): nn.Dropout2d is identity here (eval mode); training would use
    # pltpu.prng_seed + pltpu.prng_random_bits for per-channel masks.
    p2 = _pool_patches_t(y1, 5)                           # (4, 250, Bp*16)
    y2 = _conv_pool_relu_t(p2, kp["conv2_w"], kp["conv2_b"],
                           tile_cols=tile_imgs * 16)      # (20, Bp*16)

    # Flatten exactly like PyTorch's view(-1, 320) (fc1 was permuted to the
    # (h, w, c) minor order in prepare_params).
    flat = y2.reshape(20, Bp, 16).transpose(1, 2, 0).reshape(Bp, 320)
    out = _mlp_head(flat, kp["fc1_w"], kp["fc1_b"],
                    kp["fc2_w"], kp["fc2_b"], block_rows=head_rows)
    return out[:B]


def init_params(key):
    ks = jax.random.split(key, 8)
    s = 0.05
    return {
        "conv1_w": s * jax.random.normal(ks[0], (10, 1, 5, 5), jnp.float32),
        "conv1_b": s * jax.random.normal(ks[1], (10,), jnp.float32),
        "conv2_w": s * jax.random.normal(ks[2], (20, 10, 5, 5), jnp.float32),
        "conv2_b": s * jax.random.normal(ks[3], (20,), jnp.float32),
        "fc1_w":   s * jax.random.normal(ks[4], (50, 320), jnp.float32),
        "fc1_b":   s * jax.random.normal(ks[5], (50,), jnp.float32),
        "fc2_w":   s * jax.random.normal(ks[6], (10, 50), jnp.float32),
        "fc2_b":   s * jax.random.normal(ks[7], (10,), jnp.float32),
    }


# Pure-JAX reference (PyTorch semantics, eval mode) for a correctness check.
def reference_forward(x_nchw, p):
    dn = ("NCHW", "OIHW", "NCHW")
    B = x_nchw.shape[0]
    hi = lax.Precision.HIGHEST
    c1 = lax.conv_general_dilated(x_nchw, p["conv1_w"], (1, 1), "VALID",
                                  dimension_numbers=dn, precision=hi)
    c1 = c1 + p["conv1_b"][None, :, None, None]
    r1 = jax.nn.relu(c1.reshape(B, 10, 12, 2, 12, 2).max(axis=(3, 5)))
    c2 = lax.conv_general_dilated(r1, p["conv2_w"], (1, 1), "VALID",
                                  dimension_numbers=dn, precision=hi)
    c2 = c2 + p["conv2_b"][None, :, None, None]
    r2 = jax.nn.relu(c2.reshape(B, 20, 4, 2, 4, 2).max(axis=(3, 5)))
    flat = r2.reshape(B, 320)
    h = jax.nn.relu(jnp.dot(flat, p["fc1_w"].T, precision=hi) + p["fc1_b"])
    y = jnp.dot(h, p["fc2_w"].T, precision=hi) + p["fc2_b"]
    return jax.nn.log_softmax(y, axis=-1)


if __name__ == "__main__":
    key = jax.random.PRNGKey(0)
    k_x, k_p = jax.random.split(key)
    # 28x28 input is required so view(-1, 320) is valid (as in the spec).
    x = jax.random.normal(k_x, (2, 1, 28, 28), jnp.float32)
    params_pt = init_params(k_p)
    kparams = prepare_params(params_pt)

    out = jax.jit(net_forward)(x, kparams)
    out = jax.block_until_ready(out)

    assert out.shape == (2, 10)
    # log_softmax rows must (approximately) exponentiate-and-sum to 1.
    assert bool(jnp.allclose(jnp.sum(jnp.exp(out), axis=-1), 1.0, atol=1e-4))
    # Cross-check against a pure-JAX reference of the PyTorch forward.
    ref = reference_forward(x, params_pt)
    assert bool(jnp.allclose(out, ref, atol=2e-2, rtol=2e-2))
    print("KERNEL_OK")
</pallas_src>

<mosaic_0001>
module attributes {stable_mosaic.version = 11 : i64} {
  func.func @_conv_pool_relu_t_kernel(%arg0: i32, %arg1: memref<4x25x1152xbf16, #tpu.memory_space<vmem>>, %arg2: memref<10x25xbf16, #tpu.memory_space<vmem>>, %arg3: memref<10x1xf32, #tpu.memory_space<vmem>>, %arg4: memref<10x1152xf32, #tpu.memory_space<vmem>>) attributes {dimension_semantics = [#tpu.dimension_semantics<parallel>], iteration_bounds = array<i64: 1>, scalar_prefetch = 0 : i64, scratch_operands = 0 : i64, tpu.core_type = #tpu.core_type<tc>, window_params = [{transform_indices = @transform_0, window_bounds = array<i64: 4, 25, 1152>}, {pipeline_mode = #tpu.pipeline_mode<synchronous>, transform_indices = @transform_1, window_bounds = array<i64: 10, 25>}, {pipeline_mode = #tpu.pipeline_mode<synchronous>, transform_indices = @transform_2, window_bounds = array<i64: 10, 1>}, {transform_indices = @transform_3, window_bounds = array<i64: 10, 1152>}]} {
    %c0 = arith.constant 0 : index
    %c0_0 = arith.constant 0 : index
    %0 = vector.load %arg2[%c0, %c0_0] : memref<10x25xbf16, #tpu.memory_space<vmem>>, vector<10x25xbf16>
    %c0_1 = arith.constant 0 : index
    %c0_2 = arith.constant 0 : index
    %c0_3 = arith.constant 0 : index
    %1 = vector.load %arg1[%c0_1, %c0_2, %c0_3] : memref<4x25x1152xbf16, #tpu.memory_space<vmem>>, vector<1x25x1152xbf16>
    %2 = vector.shape_cast %1 : vector<1x25x1152xbf16> to vector<25x1152xbf16>
    %cst = arith.constant dense<0.000000e+00> : vector<10x1152xf32>
    %3 = tpu.matmul %0, %2, %cst {dimension_numbers = #tpu.dot_dimension_numbers<[1], [0], [0], [1], [0, 0, 1, 1], [], []>} : vector<10x25xbf16>, vector<25x1152xbf16>, vector<10x1152xf32> -> vector<10x1152xf32>
    %c1 = arith.constant 1 : index
    %c0_4 = arith.constant 0 : index
    %c0_5 = arith.constant 0 : index
    %4 = vector.load %arg1[%c1, %c0_4, %c0_5] : memref<4x25x1152xbf16, #tpu.memory_space<vmem>>, vector<1x25x1152xbf16>
    %5 = vector.shape_cast %4 : vector<1x25x1152xbf16> to vector<25x1152xbf16>
    %cst_6 = arith.constant dense<0.000000e+00> : vector<10x1152xf32>
    %6 = tpu.matmul %0, %5, %cst_6 {dimension_numbers = #tpu.dot_dimension_numbers<[1], [0], [0], [1], [0, 0, 1, 1], [], []>} : vector<10x25xbf16>, vector<25x1152xbf16>, vector<10x1152xf32> -> vector<10x1152xf32>
    %7 = arith.maximumf %3, %6 : vector<10x1152xf32>
    %c2 = arith.constant 2 : index
    %c0_7 = arith.constant 0 : index
    %c0_8 = arith.constant 0 : index
    %8 = vector.load %arg1[%c2, %c0_7, %c0_8] : memref<4x25x1152xbf16, #tpu.memory_space<vmem>>, vector<1x25x1152xbf16>
    %9 = vector.shape_cast %8 : vector<1x25x1152xbf16> to vector<25x1152xbf16>
    %cst_9 = arith.constant dense<0.000000e+00> : vector<10x1152xf32>
    %10 = tpu.matmul %0, %9, %cst_9 {dimension_numbers = #tpu.dot_dimension_numbers<[1], [0], [0], [1], [0, 0, 1, 1], [], []>} : vector<10x25xbf16>, vector<25x1152xbf16>, vector<10x1152xf32> -> vector<10x1152xf32>
    %11 = arith.maximumf %7, %10 : vector<10x1152xf32>
    %c3 = arith.constant 3 : index
    %c0_10 = arith.constant 0 : index
    %c0_11 = arith.constant 0 : index
    %12 = vector.load %arg1[%c3, %c0_10, %c0_11] : memref<4x25x1152xbf16, #tpu.memory_space<vmem>>, vector<1x25x1152xbf16>
    %13 = vector.shape_cast %12 : vector<1x25x1152xbf16> to vector<25x1152xbf16>
    %cst_12 = arith.constant dense<0.000000e+00> : vector<10x1152xf32>
    %14 = tpu.matmul %0, %13, %cst_12 {dimension_numbers = #tpu.dot_dimension_numbers<[1], [0], [0], [1], [0, 0, 1, 1], [], []>} : vector<10x25xbf16>, vector<25x1152xbf16>, vector<10x1152xf32> -> vector<10x1152xf32>
    %15 = arith.maximumf %11, %14 : vector<10x1152xf32>
    %c0_13 = arith.constant 0 : index
    %c0_14 = arith.constant 0 : index
    %16 = vector.load %arg3[%c0_13, %c0_14] : memref<10x1xf32, #tpu.memory_space<vmem>>, vector<10x1xf32>
    %17 = vector.broadcast %16 : vector<10x1xf32> to vector<10x1152xf32>
    %18 = arith.addf %15, %17 : vector<10x1152xf32>
    %cst_15 = arith.constant 0.000000e+00 : f32
    %19 = vector.broadcast %cst_15 : f32 to vector<10x1152xf32>
    %20 = arith.maximumf %18, %19 : vector<10x1152xf32>
    %c0_16 = arith.constant 0 : index
    %c0_17 = arith.constant 0 : index
    %21 = vector.load %arg4[%c0_16, %c0_17] : memref<10x1152xf32, #tpu.memory_space<vmem>>, vector<10x1152xf32>
    tpu.vector_store %arg4[%c0_16, %c0_17], %20 {strides = array<i32>} : memref<10x1152xf32, #tpu.memory_space<vmem>>, vector<10x1152xf32>,
    return
  }
  func.func @transform_0(%arg0: i32) -> (i32, i32, i32) {
    %c0_i32 = arith.constant 0 : i32
    %c0_i32_0 = arith.constant 0 : i32
    %c0_i32_1 = arith.constant 0 : i32
    return %c0_i32, %c0_i32_0, %arg0 : i32, i32, i32
  }
  func.func @transform_1(%arg0: i32) -> (i32, i32) {
    %c0_i32 = arith.constant 0 : i32
    %c0_i32_0 = arith.constant 0 : i32
    %c0_i32_1 = arith.constant 0 : i32
    return %c0_i32, %c0_i32_0 : i32, i32
  }
  func.func @transform_2(%arg0: i32) -> (i32, i32) {
    %c0_i32 = arith.constant 0 : i32
    %c0_i32_0 = arith.constant 0 : i32
    %c0_i32_1 = arith.constant 0 : i32
    return %c0_i32, %c0_i32_0 : i32, i32
  }
  func.func @transform_3(%arg0: i32) -> (i32, i32) {
    %c0_i32 = arith.constant 0 : i32
    %c0_i32_0 = arith.constant 0 : i32
    return %c0_i32, %arg0 : i32, i32
  }
}

module attributes {stable_mosaic.version = 11 : i64} {
  func.func @_conv_pool_relu_t_kernel(%arg0: i32, %arg1: memref<4x250x128xbf16, #tpu.memory_space<vmem>>, %arg2: memref<20x250xbf16, #tpu.memory_space<vmem>>, %arg3: memref<20x1xf32, #tpu.memory_space<vmem>>, %arg4: memref<20x128xf32, #tpu.memory_space<vmem>>) attributes {dimension_semantics = [#tpu.dimension_semantics<parallel>], iteration_bounds = array<i64: 1>, scalar_prefetch = 0 : i64, scratch_operands = 0 : i64, tpu.core_type = #tpu.core_type<tc>, window_params = [{transform_indices = @transform_0, window_bounds = array<i64: 4, 250, 128>}, {pipeline_mode = #tpu.pipeline_mode<synchronous>, transform_indices = @transform_1, window_bounds = array<i64: 20, 250>}, {pipeline_mode = #tpu.pipeline_mode<synchronous>, transform_indices = @transform_2, window_bounds = array<i64: 20, 1>}, {transform_indices = @transform_3, window_bounds = array<i64: 20, 128>}]} {
    %c0 = arith.constant 0 : index
    %c0_0 = arith.constant 0 : index
    %0 = vector.load %arg2[%c0, %c0_0] : memref<20x250xbf16, #tpu.memory_space<vmem>>, vector<20x250xbf16>
    %c0_1 = arith.constant 0 : index
    %c0_2 = arith.constant 0 : index
    %c0_3 = arith.constant 0 : index
    %1 = vector.load %arg1[%c0_1, %c0_2, %c0_3] : memref<4x250x128xbf16, #tpu.memory_space<vmem>>, vector<1x250x128xbf16>
    %2 = vector.shape_cast %1 : vector<1x250x128xbf16> to vector<250x128xbf16>
    %cst = arith.constant dense<0.000000e+00> : vector<20x128xf32>
    %3 = tpu.matmul %0, %2, %cst {dimension_numbers = #tpu.dot_dimension_numbers<[1], [0], [0], [1], [0, 0, 1, 1], [], []>} : vector<20x250xbf16>, vector<250x128xbf16>, vector<20x128xf32> -> vector<20x128xf32>
    %c1 = arith.constant 1 : index
    %c0_4 = arith.constant 0 : index
    %c0_5 = arith.constant 0 : index
    %4 = vector.load %arg1[%c1, %c0_4, %c0_5] : memref<4x250x128xbf16, #tpu.memory_space<vmem>>, vector<1x250x128xbf16>
    %5 = vector.shape_cast %4 : vector<1x250x128xbf16> to vector<250x128xbf16>
    %cst_6 = arith.constant dense<0.000000e+00> : vector<20x128xf32>
    %6 = tpu.matmul %0, %5, %cst_6 {dimension_numbers = #tpu.dot_dimension_numbers<[1], [0], [0], [1], [0, 0, 1, 1], [], []>} : vector<20x250xbf16>, vector<250x128xbf16>, vector<20x128xf32> -> vector<20x128xf32>
    %7 = arith.maximumf %3, %6 : vector<20x128xf32>
    %c2 = arith.constant 2 : index
    %c0_7 = arith.constant 0 : index
    %c0_8 = arith.constant 0 : index
    %8 = vector.load %arg1[%c2, %c0_7, %c0_8] : memref<4x250x128xbf16, #tpu.memory_space<vmem>>, vector<1x250x128xbf16>
    %9 = vector.shape_cast %8 : vector<1x250x128xbf16> to vector<250x128xbf16>
    %cst_9 = arith.constant dense<0.000000e+00> : vector<20x128xf32>
    %10 = tpu.matmul %0, %9, %cst_9 {dimension_numbers = #tpu.dot_dimension_numbers<[1], [0], [0], [1], [0, 0, 1, 1], [], []>} : vector<20x250xbf16>, vector<250x128xbf16>, vector<20x128xf32> -> vector<20x128xf32>
    %11 = arith.maximumf %7, %10 : vector<20x128xf32>
    %c3 = arith.constant 3 : index
    %c0_10 = arith.constant 0 : index
    %c0_11 = arith.constant 0 : index
    %12 = vector.load %arg1[%c3, %c0_10, %c0_11] : memref<4x250x128xbf16, #tpu.memory_space<vmem>>, vector<1x250x128xbf16>
    %13 = vector.shape_cast %12 : vector<1x250x128xbf16> to vector<250x128xbf16>
    %cst_12 = arith.constant dense<0.000000e+00> : vector<20x128xf32>
    %14 = tpu.matmul %0, %13, %cst_12 {dimension_numbers = #tpu.dot_dimension_numbers<[1], [0], [0], [1], [0, 0, 1, 1], [], []>} : vector<20x250xbf16>, vector<250x128xbf16>, vector<20x128xf32> -> vector<20x128xf32>
    %15 = arith.maximumf %11, %14 : vector<20x128xf32>
    %c0_13 = arith.constant 0 : index
    %c0_14 = arith.constant 0 : index
    %16 = vector.load %arg3[%c0_13, %c0_14] : memref<20x1xf32, #tpu.memory_space<vmem>>, vector<20x1xf32>
    %17 = vector.broadcast %16 : vector<20x1xf32> to vector<20x128xf32>
    %18 = arith.addf %15, %17 : vector<20x128xf32>
    %cst_15 = arith.constant 0.000000e+00 : f32
    %19 = vector.broadcast %cst_15 : f32 to vector<20x128xf32>
    %20 = arith.maximumf %18, %19 : vector<20x128xf32>
    %c0_16 = arith.constant 0 : index
    %c0_17 = arith.constant 0 : index
    %21 = vector.load %arg4[%c0_16, %c0_17] : memref<20x128xf32, #tpu.memory_space<vmem>>, vector<20x128xf32>
    tpu.vector_store %arg4[%c0_16, %c0_17], %20 {strides = array<i32>} : memref<20x128xf32, #tpu.memory_space<vmem>>, vector<20x128xf32>,
    return
  }
  func.func @transform_0(%arg0: i32) -> (i32, i32, i32) {
    %c0_i32 = arith.constant 0 : i32
    %c0_i32_0 = arith.constant 0 : i32
    %c0_i32_1 = arith.constant 0 : i32
    return %c0_i32, %c0_i32_0, %arg0 : i32, i32, i32
  }
  func.func @transform_1(%arg0: i32) -> (i32, i32) {
    %c0_i32 = arith.constant 0 : i32
    %c0_i32_0 = arith.constant 0 : i32
    %c0_i32_1 = arith.constant 0 : i32
    return %c0_i32, %c0_i32_0 : i32, i32
  }
  func.func @transform_2(%arg0: i32) -> (i32, i32) {
    %c0_i32 = arith.constant 0 : i32
    %c0_i32_0 = arith.constant 0 : i32
    %c0_i32_1 = arith.constant 0 : i32
    return %c0_i32, %c0_i32_0 : i32, i32
  }
  func.func @transform_3(%arg0: i32) -> (i32, i32) {
    %c0_i32 = arith.constant 0 : i32
    %c0_i32_0 = arith.constant 0 : i32
    return %c0_i32, %arg0 : i32, i32
  }
}

module attributes {stable_mosaic.version = 11 : i64} {
  func.func @_mlp_head_kernel(%arg0: i32, %arg1: memref<8x320xf32, #tpu.memory_space<vmem>>, %arg2: memref<320x64xbf16, #tpu.memory_space<vmem>>, %arg3: memref<1x64xf32, #tpu.memory_space<vmem>>, %arg4: memref<64x10xbf16, #tpu.memory_space<vmem>>, %arg5: memref<1x10xf32, #tpu.memory_space<vmem>>, %arg6: memref<8x10xf32, #tpu.memory_space<vmem>>) attributes {dimension_semantics = [#tpu.dimension_semantics<parallel>], iteration_bounds = array<i64: 1>, scalar_prefetch = 0 : i64, scratch_operands = 0 : i64, tpu.core_type = #tpu.core_type<tc>, window_params = [{transform_indices = @transform_0, window_bounds = array<i64: 8, 320>}, {pipeline_mode = #tpu.pipeline_mode<synchronous>, transform_indices = @transform_1, window_bounds = array<i64: 320, 64>}, {pipeline_mode = #tpu.pipeline_mode<synchronous>, transform_indices = @transform_2, window_bounds = array<i64: 1, 64>}, {pipeline_mode = #tpu.pipeline_mode<synchronous>, transform_indices = @transform_3, window_bounds = array<i64: 64, 10>}, {pipeline_mode = #tpu.pipeline_mode<synchronous>, transform_indices = @transform_4, window_bounds = array<i64: 1, 10>}, {transform_indices = @transform_5, window_bounds = array<i64: 8, 10>}]} {
    %c0 = arith.constant 0 : index
    %c0_0 = arith.constant 0 : index
    %0 = vector.load %arg1[%c0, %c0_0] : memref<8x320xf32, #tpu.memory_space<vmem>>, vector<8x320xf32>
    %1 = arith.truncf %0 : vector<8x320xf32> to vector<8x320xbf16>
    %c0_1 = arith.constant 0 : index
    %c0_2 = arith.constant 0 : index
    %2 = vector.load %arg2[%c0_1, %c0_2] : memref<320x64xbf16, #tpu.memory_space<vmem>>, vector<320x64xbf16>
    %cst = arith.constant dense<0.000000e+00> : vector<8x64xf32>
    %3 = tpu.matmul %1, %2, %cst {dimension_numbers = #tpu.dot_dimension_numbers<[1], [0], [0], [1], [0, 0, 1, 1], [], []>} : vector<8x320xbf16>, vector<320x64xbf16>, vector<8x64xf32> -> vector<8x64xf32>
    %c0_3 = arith.constant 0 : index
    %c0_4 = arith.constant 0 : index
    %4 = vector.load %arg3[%c0_3, %c0_4] : memref<1x64xf32, #tpu.memory_space<vmem>>, vector<1x64xf32>
    %5 = vector.broadcast %4 : vector<1x64xf32> to vector<8x64xf32>
    %6 = arith.addf %3, %5 : vector<8x64xf32>
    %cst_5 = arith.constant 0.000000e+00 : f32
    %7 = vector.broadcast %cst_5 : f32 to vector<8x64xf32>
    %8 = arith.maximumf %6, %7 : vector<8x64xf32>
    %9 = arith.truncf %8 : vector<8x64xf32> to vector<8x64xbf16>
    %c0_6 = arith.constant 0 : index
    %c0_7 = arith.constant 0 : index
    %10 = vector.load %arg4[%c0_6, %c0_7] : memref<64x10xbf16, #tpu.memory_space<vmem>>, vector<64x10xbf16>
    %cst_8 = arith.constant dense<0.000000e+00> : vector<8x10xf32>
    %11 = tpu.matmul %9, %10, %cst_8 {dimension_numbers = #tpu.dot_dimension_numbers<[1], [0], [0], [1], [0, 0, 1, 1], [], []>} : vector<8x64xbf16>, vector<64x10xbf16>, vector<8x10xf32> -> vector<8x10xf32>
    %c0_9 = arith.constant 0 : index
    %c0_10 = arith.constant 0 : index
    %12 = vector.load %arg5[%c0_9, %c0_10] : memref<1x10xf32, #tpu.memory_space<vmem>>, vector<1x10xf32>
    %13 = vector.broadcast %12 : vector<1x10xf32> to vector<8x10xf32>
    %14 = arith.addf %11, %13 : vector<8x10xf32>
    %cst_11 = arith.constant dense<0xFF800000> : vector<8xf32>
    %15 = vector.multi_reduction <maximumf>, %14, %cst_11 [1] : vector<8x10xf32> to vector<8xf32>
    %16 = vector.shape_cast %15 : vector<8xf32> to vector<8x1xf32>
    %17 = vector.broadcast %16 : vector<8x1xf32> to vector<8x10xf32>
    %18 = arith.subf %14, %17 : vector<8x10xf32>
    %19 = math.exp %18 : vector<8x10xf32>
    %cst_12 = arith.constant dense<0.000000e+00> : vector<8xf32>
    %20 = vector.multi_reduction <add>, %19, %cst_12 [1] : vector<8x10xf32> to vector<8xf32>
    %21 = vector.shape_cast %20 : vector<8xf32> to vector<8x1xf32>
    %22 = math.log %21 : vector<8x1xf32>
    %23 = vector.broadcast %16 : vector<8x1xf32> to vector<8x10xf32>
    %24 = arith.subf %14, %23 : vector<8x10xf32>
    %25 = vector.broadcast %22 : vector<8x1xf32> to vector<8x10xf32>
    %26 = arith.subf %24, %25 : vector<8x10xf32>
    %c0_13 = arith.constant 0 : index
    %c0_14 = arith.constant 0 : index
    %27 = vector.load %arg6[%c0_13, %c0_14] : memref<8x10xf32, #tpu.memory_space<vmem>>, vector<8x10xf32>
    tpu.vector_store %arg6[%c0_13, %c0_14], %26 {strides = array<i32>} : memref<8x10xf32, #tpu.memory_space<vmem>>, vector<8x10xf32>,
    return
  }
  func.func @transform_0(%arg0: i32) -> (i32, i32) {
    %c0_i32 = arith.constant 0 : i32
    %c0_i32_0 = arith.constant 0 : i32
    return %arg0, %c0_i32 : i32, i32
  }
  func.func @transform_1(%arg0: i32) -> (i32, i32) {
    %c0_i32 = arith.constant 0 : i32
    %c0_i32_0 = arith.constant 0 : i32
    %c0_i32_1 = arith.constant 0 : i32
    return %c0_i32, %c0_i32_0 : i32, i32
  }
  func.func @transform_2(%arg0: i32) -> (i32, i32) {
    %c0_i32 = arith.constant 0 : i32
    %c0_i32_0 = arith.constant 0 : i32
    %c0_i32_1 = arith.constant 0 : i32
    return %c0_i32, %c0_i32_0 : i32, i32
  }
  func.func @transform_3(%arg0: i32) -> (i32, i32) {
    %c0_i32 = arith.constant 0 : i32
    %c0_i32_0 = arith.constant 0 : i32
    %c0_i32_1 = arith.constant 0 : i32
    return %c0_i32, %c0_i32_0 : i32, i32
  }
  func.func @transform_4(%arg0: i32) -> (i32, i32) {
    %c0_i32 = arith.constant 0 : i32
    %c0_i32_0 = arith.constant 0 : i32
    %c0_i32_1 = arith.constant 0 : i32
    return %c0_i32, %c0_i32_0 : i32, i32
  }
  func.func @transform_5(%arg0: i32) -> (i32, i32) {
    %c0_i32 = arith.constant 0 : i32
    %c0_i32_0 = arith.constant 0 : i32
    return %arg0, %c0_i32 : i32, i32
  }
}

</mosaic_0001>

<bundles_post_ra>
// kernel: net_forward.3
= control target key start
LH: loop header
LB: loop body
LE: loop exit
PB: predicated region body
PF: predicated region fallthrough
CT: control target
= control target key end

     0   :  { %vm129_vm0 = vcmask 1043456   ;;  %vm130_vm1 = vcmask 1044480   ;;  %v1645_v2 = vmov 65535   ;;  %vm125_vm2 = vcmask 203776   ;;  %s2455_s0 = inlined_call_operand.vmem [shape: bf16[4,25,1152], index: 0, kind: input, shape index: {}]   ;;  %s2456_s1 = inlined_call_operand.vmem [shape: bf16[10,25], index: 1, kind: input, shape index: {}]   ;;  %s2457_s2 = inlined_call_operand.vmem [shape: f32[10,1], index: 2, kind: input, shape index: {}]   ;;  %s2458_s3 = inlined_call_operand.vmem [shape: f32[10,1152], index: 3, kind: output, shape index: {}]  }
   0x1   :  { %v1223_v0 = vld [vmem:[%s2455_s0 + $0x48] sm:$0xf]  ;;  %v1583_v1 = vld [vmem:[%s2455_s0 + $0x68] sm:$0x10]  ;;  %v131_v3 = vsel %vm129_vm0, 4294967295, %v1645_v2 }
   0x2   :  { %v1224_v4 = vor.u32 %v1583_v1, %v1223_v0  ;;  %v1673_v5 = vsel %vm130_vm1, %v131_v3, 0  ;;  %v1579_v6 = vld [vmem:[%s2455_s0 + $0x4c] sm:$0xf]  ;;  %v1225_v7 = vld [vmem:[%s2455_s0 + $0x6c] sm:$0x10] }
   0x3   :  { %v1228_v8 = vor.u32 %v1579_v6, %v1225_v7  ;;  %v1231_v9 = vld [vmem:[%s2455_s0 + $0x50] sm:$0xf]  ;;  %v1584_v10 = vld [vmem:[%s2455_s0 + $0x70] sm:$0x10]  ;;  %v1233_v14 = vld [vmem:[%s2455_s0 + $0x74] sm:$0x10] }
   0x4   :  { %v1580_v11 = vld [vmem:[%s2455_s0 + $0x54] sm:$0xf]  ;;  %v134_v12 = vand.u32 %v1224_v4, %v1673_v5  ;;  %v1232_v13 = vor.u32 %v1584_v10, %v1231_v9  ;;  %v1187_v15 = vld [vmem:[%s2455_s0] sm:$0xf]  ;;  %v1574_v16 = vld [vmem:[%s2455_s0 + $0x20] sm:$0xf0] }
   0x5   :  { %v137_v17 = vand.u32 %v1228_v8, %v1673_v5  ;;  %v1236_v18 = vor.u32 %v1580_v11, %v1233_v14  ;;  %v1570_v19 = vld [vmem:[%s2455_s0 + $0x4] sm:$0xf]  ;;  %v1189_v20 = vld [vmem:[%s2455_s0 + $0x24] sm:$0xf0]  ;;  %v1188_v23 = vor.u32 %v1574_v16, %v1187_v15  ;;  %v1575_v24 = vld [vmem:[%s2455_s0 + $0x28] sm:$0xf0] }
   0x6   :  { %v1195_v21 = vld [vmem:[%s2455_s0 + $0x8] sm:$0xf]  ;;  %166 = vmatpush.bf16.msra.mxu0 %v134_v12  ;;  %v140_v22 = vand.u32 %v1232_v13, %v1673_v5  ;;  %v1571_v25 = vld [vmem:[%s2455_s0 + $0xc] sm:$0xf]  ;;  %v1197_v26 = vld [vmem:[%s2455_s0 + $0x2c] sm:$0xf0]  ;;  %v1192_v28 = vor.u32 %v1570_v19, %v1189_v20 }
   0x7   :  { %180 = vmatpush.bf16.msra.mxu1 %v137_v17  ;;  %v143_v27 = vand.u32 %v1236_v18, %v1673_v5  ;;  %v1183_v29 = vld [vmem:[%s2456_s1] sm:$0xf]  ;;  %v1569_v30 = vld [vmem:[%s2456_s1] sm:$0x10]  ;;  %v1196_v32 = vor.u32 %v1575_v24, %v1195_v21  ;;  %v1249_v35 = vld [vmem:[%s2455_s0 + $0x84] sm:$0x10]  ;;  %v1200_v36 = vor.u32 %v1571_v25, %v1197_v26 }
   0x8   :  { %v1247_v31 = vld [vmem:[%s2455_s0 + $0x60] sm:$0xf]  ;;  %194 = vmatpush.bf16.msra.mxu2 %v140_v22  ;;  %v1586_v33 = vld [vmem:[%s2455_s0 + $0x80] sm:$0x10]  ;;  %v1739_v37 = vor.u32 %v1569_v30, %v1183_v29  ;;  %v1239_v40 = vld [vmem:[%s2455_s0 + $0x58] sm:$0xf] }
   0x9   :  { %v1582_v34 = vld [vmem:[%s2455_s0 + $0x64] sm:$0xf]  ;;  %208 = vmatpush.bf16.msra.mxu3 %v143_v27  ;;  %v1248_v38 = vor.u32 %v1586_v33, %v1247_v31  ;;  %v1585_v41 = vld [vmem:[%s2455_s0 + $0x78] sm:$0x10]  ;;  %v1241_v44 = vld [vmem:[%s2455_s0 + $0x7c] sm:$0x10] }
   0xa   :  { %v1252_v39 = vor.u32 %v1582_v34, %v1249_v35  ;;  %v1581_v42 = vld [vmem:[%s2455_s0 + $0x5c] sm:$0xf]  ;;  %167 = vmatpush.bf16.msra.mxu0 %v1188_v23  ;;  %v1240_v43 = vor.u32 %v1585_v41, %v1239_v40  ;;  %v1211_v45 = vld [vmem:[%s2455_s0 + $0x18] sm:$0xf]  ;;  %v1213_v51 = vld [vmem:[%s2455_s0 + $0x3c] sm:$0xf0] }
   0xb   :  { %v1577_v46 = vld [vmem:[%s2455_s0 + $0x38] sm:$0xf0]  ;;  %181 = vmatpush.bf16.msra.mxu1 %v1192_v28  ;;  %v152_v47 = vand.u32 %v1248_v38, %v1673_v5  ;;  %v1244_v49 = vor.u32 %v1581_v42, %v1241_v44  ;;  %v1203_v52 = vld [vmem:[%s2455_s0 + $0x10] sm:$0xf]  ;;  %v1576_v54 = vld [vmem:[%s2455_s0 + $0x30] sm:$0xf0] }
   0xc   :  { %v155_v48 = vand.u32 %v1252_v39, %v1673_v5  ;;  %v1573_v50 = vld [vmem:[%s2455_s0 + $0x1c] sm:$0xf]  ;;  %195 = vmatpush.bf16.msra.mxu2 %v1196_v32  ;;  %v146_v53 = vand.u32 %v1240_v43, %v1673_v5  ;;  %v1572_v55 = vld [vmem:[%s2455_s0 + $0x14] sm:$0xf]  ;;  %v1205_v56 = vld [vmem:[%s2455_s0 + $0x34] sm:$0xf0]  ;;  %v1212_v61 = vor.u32 %v1577_v46, %v1211_v45  ;;  %v1204_v8 = vor.u32 %v1576_v54, %v1203_v52 }
   0xd   :  { %209 = vmatpush.bf16.msra.mxu3 %v1200_v36  ;;  %1257 = vmatmul.msk.bf16.vlgmr.msra.gmra.mxu0 %vm125_vm2, %v1739_v37  ;;  %v149_v57 = vand.u32 %v1244_v49, %v1673_v5  ;;  %v1597_v58 = vld [vmem:[%s2455_s0 + $0xdc] sm:$0xf]  ;;  %v1326_v59 = vld [vmem:[%s2455_s0 + $0xfc] sm:$0x10]  ;;  %v1602_v63 = vld [vmem:[%s2455_s0 + $0x100] sm:$0x10]  ;;  %v1216_v2 = vor.u32 %v1573_v50, %v1213_v51  ;;  %v1208_v13 = vor.u32 %v1572_v55, %v1205_v56 }
   0xe   :  { %v1332_v60 = vld [vmem:[%s2455_s0 + $0xe0] sm:$0xf]  ;;  %1258 = vmatmul.msk.bf16.vlgmr.msra.gmra.mxu1 %vm125_vm2, %v1739_v37  ;;  %v1329_v62 = vor.u32 %v1597_v58, %v1326_v59  ;;  %v1255_v0 = vld [vmem:[%s2455_s0 + $0x68] sm:$0xf]  ;;  %v1587_v1 = vld [vmem:[%s2455_s0 + $0x88] sm:$0x10]  ;;  %222 = vmatpush.bf16.msrb.mxu0 %v146_v53 }
   0xf   :  { %1259 = vmatmul.msk.bf16.vlgmr.msra.gmra.mxu2 %vm125_vm2, %v1739_v37  ;;  %v1333_v3 = vor.u32 %v1602_v63, %v1332_v60  ;;  %v1256_v4 = vor.u32 %v1587_v1, %v1255_v0  ;;  %v1324_v6 = vld [vmem:[%s2455_s0 + $0xd8] sm:$0xf]  ;;  %v1601_v7 = vld [vmem:[%s2455_s0 + $0xf8] sm:$0x10]  ;;  %v1588_v11 = vld [vmem:[%s2455_s0 + $0x94] sm:$0xf]  ;;  %236 = vmatpush.bf16.msrb.mxu1 %v149_v57 }
  0x10   :  { %250 = vmatpush.bf16.msrb.mxu2 %v152_v47  ;;  %1260 = vmatmul.msk.bf16.vlgmr.msra.gmra.mxu3 %vm125_vm2, %v1739_v37  ;;  %v394_v9 = vand.u32 %v1329_v62, %v1673_v5  ;;  %v1325_v10 = vor.u32 %v1601_v7, %v1324_v6  ;;  %v1290_v12 = vld [vmem:[%s2455_s0 + $0xb4] sm:$0xf0]  ;;  %v1593_v17 = vld [vmem:[%s2455_s0 + $0xb8] sm:$0xf0]  ;;  %v1219_v19 = vld [vmem:[%s2455_s0 + $0x20] sm:$0xf] }
  0x11   :  { %264 = vmatpush.bf16.msrb.mxu3 %v155_v48  ;;  %v397_v14 = vand.u32 %v1333_v3, %v1673_v5  ;;  %v158_v15 = vand.u32 %v1256_v4, %v1673_v5  ;;  %v1296_v16 = vld [vmem:[%s2455_s0 + $0x98] sm:$0xf]  ;;  %v1578_v20 = vld [vmem:[%s2455_s0 + $0x40] sm:$0xf0]  ;;  %v1293_v21 = vor.u32 %v1588_v11, %v1290_v12  ;;  %v1288_v22 = vld [vmem:[%s2455_s0 + $0x90] sm:$0xf] }
  0x12   :  { %v391_v18 = vand.u32 %v1325_v10, %v1673_v5  ;;  %v1592_v23 = vld [vmem:[%s2455_s0 + $0xb0] sm:$0xf0]  ;;  %v1598_v24 = vld [vmem:[%s2455_s0 + $0xe4] sm:$0xf]  ;;  %223 = vmatpush.bf16.msrb.mxu0 %v1204_v8  ;;  %v1297_v25 = vor.u32 %v1593_v17, %v1296_v16  ;;  %v1334_v26 = vld [vmem:[%s2455_s0 + $0x104] sm:$0x10]  ;;  %v1220_v29 = vor.u32 %v1578_v20, %v1219_v19 }
  0x13   :  { %v1340_v27 = vld [vmem:[%s2455_s0 + $0xe8] sm:$0xf]  ;;  %v1603_v28 = vld [vmem:[%s2455_s0 + $0x108] sm:$0x10]  ;;  %237 = vmatpush.bf16.msrb.mxu1 %v1208_v13  ;;  %v1342_v31 = vld [vmem:[%s2455_s0 + $0x10c] sm:$0x10]  ;;  %v1289_v32 = vor.u32 %v1592_v23, %v1288_v22  ;;  %v1337_v35 = vor.u32 %v1598_v24, %v1334_v26 }
  0x14   :  { %251 = vmatpush.bf16.msrb.mxu2 %v1212_v61  ;;  %v1599_v30 = vld [vmem:[%s2455_s0 + $0xec] sm:$0xf]  ;;  %v1348_v33 = vld [vmem:[%s2455_s0 + $0xf0] sm:$0xf]  ;;  %v1604_v34 = vld [vmem:[%s2455_s0 + $0x110] sm:$0x10]  ;;  %v1341_v36 = vor.u32 %v1603_v28, %v1340_v27 }
  0x15   :  { %265 = vmatpush.bf16.msrb.mxu3 %v1216_v2  ;;  %v1345_v38 = vor.u32 %v1599_v30, %v1342_v31  ;;  %v1349_v39 = vor.u32 %v1604_v34, %v1348_v33  ;;  %v400_v40 = vand.u32 %v1337_v35, %v1673_v5  ;;  %v1589_v42 = vld [vmem:[%s2455_s0 + $0x9c] sm:$0xf]  ;;  %v1298_v43 = vld [vmem:[%s2455_s0 + $0xbc] sm:$0xf0]  ;;  %v1594_v46 = vld [vmem:[%s2455_s0 + $0xc0] sm:$0xf0] }
  0x16   :  { %278 = vmatpush.bf16.msra.mxu0 %v158_v15  ;;  %v403_v41 = vand.u32 %v1341_v36, %v1673_v5  ;;  %v1304_v45 = vld [vmem:[%s2455_s0 + $0xa0] sm:$0xf]  ;;  %v1590_v48 = vld [vmem:[%s2455_s0 + $0xa4] sm:$0xf]  ;;  %v1306_v49 = vld [vmem:[%s2455_s0 + $0xc4] sm:$0xf0]  ;;  %v1301_v52 = vor.u32 %v1589_v42, %v1298_v43 }
  0x17   :  { %423 = vmatpush.bf16.msra.mxu1 %v391_v18  ;;  %v406_v44 = vand.u32 %v1345_v38, %v1673_v5  ;;  %v409_v47 = vand.u32 %v1349_v39, %v1673_v5  ;;  %v1312_v50 = vld [vmem:[%s2455_s0 + $0xa8] sm:$0xf]  ;;  %v1595_v51 = vld [vmem:[%s2455_s0 + $0xc8] sm:$0xf0]  ;;  %v1305_v53 = vor.u32 %v1594_v46, %v1304_v45  ;;  %v1309_v54 = vor.u32 %v1590_v48, %v1306_v49  ;;  %v1600_v56 = vld [vmem:[%s2455_s0 + $0xf4] sm:$0xf] }
  0x18   :  { %437 = vmatpush.bf16.msra.mxu2 %v394_v9  ;;  %v1313_v55 = vor.u32 %v1595_v51, %v1312_v50  ;;  %v1350_v57 = vld [vmem:[%s2455_s0 + $0x114] sm:$0x10]  ;;  %v1605_v59 = vld [vmem:[%s2455_s0 + $0x118] sm:$0x10]  ;;  %v1425_v60 = vld [vmem:[%s2455_s0 + $0x168] sm:$0xf] }
  0x19   :  { %451 = vmatpush.bf16.msra.mxu3 %v397_v14  ;;  %v1356_v58 = vld [vmem:[%s2455_s0 + $0xf8] sm:$0xf]  ;;  %v1619_v61 = vld [vmem:[%s2455_s0 + $0x188] sm:$0x10]  ;;  %v1427_v63 = vld [vmem:[%s2455_s0 + $0x18c] sm:$0x10]  ;;  %v1353_v0 = vor.u32 %v1600_v56, %v1350_v57 }
  0x1a   :  { %279 = vmatpush.bf16.msra.mxu0 %v1220_v29  ;;  %v1615_v62 = vld [vmem:[%s2455_s0 + $0x16c] sm:$0xf]  ;;  %v1357_v1 = vor.u32 %v1605_v59, %v1356_v58  ;;  %v1426_v2 = vor.u32 %v1619_v61, %v1425_v60  ;;  %v1314_v8 = vld [vmem:[%s2455_s0 + $0xcc] sm:$0xf0]  ;;  %v1596_v11 = vld [vmem:[%s2455_s0 + $0xd0] sm:$0xf0] }
  0x1b   :  { %424 = vmatpush.bf16.msra.mxu1 %v1289_v32  ;;  %v1430_v3 = vor.u32 %v1615_v62, %v1427_v63  ;;  %v412_v4 = vand.u32 %v1353_v0, %v1673_v5  ;;  %v1591_v7 = vld [vmem:[%s2455_s0 + $0xac] sm:$0xf]  ;;  %v1320_v10 = vld [vmem:[%s2455_s0 + $0xb0] sm:$0xf]  ;;  %v1389_v13 = vld [vmem:[%s2455_s0 + $0x120] sm:$0xf] }
  0x1c   :  { %438 = vmatpush.bf16.msra.mxu2 %v1293_v21  ;;  %v415_v6 = vand.u32 %v1357_v1, %v1673_v5  ;;  %v666_v9 = vand.u32 %v1426_v2, %v1673_v5  ;;  %v1610_v14 = vld [vmem:[%s2455_s0 + $0x140] sm:$0xf0]  ;;  %v1391_v16 = vld [vmem:[%s2455_s0 + $0x144] sm:$0xf0]  ;;  %v1317_v17 = vor.u32 %v1591_v7, %v1314_v8  ;;  %v1321_v18 = vor.u32 %v1596_v11, %v1320_v10  ;;  %v1433_v21 = vld [vmem:[%s2455_s0 + $0x170] sm:$0xf] }
  0x1d   :  { %452 = vmatpush.bf16.msra.mxu3 %v1297_v25  ;;  %1261 = vmatmul.msk.bf16.vlgmr.msrb.gmra.mxu0 %vm125_vm2, %v1739_v37  ;;  %v669_v12 = vand.u32 %v1430_v3, %v1673_v5  ;;  %v1606_v15 = vld [vmem:[%s2455_s0 + $0x124] sm:$0xf]  ;;  %v1390_v19 = vor.u32 %v1610_v14, %v1389_v13  ;;  %v1620_v22 = vld [vmem:[%s2455_s0 + $0x190] sm:$0x10]  ;;  %v1435_v24 = vld [vmem:[%s2455_s0 + $0x194] sm:$0x10] }
  0x1e   :  { %1262 = vmatmul.msk.bf16.vlgmr.msrb.gmra.mxu1 %vm125_vm2, %v1739_v37  ;;  %465 = vmatpush.bf16.msrb.mxu0 %v400_v40  ;;  %v1394_v20 = vor.u32 %v1606_v15, %v1391_v16  ;;  %v1616_v23 = vld [vmem:[%s2455_s0 + $0x174] sm:$0xf]  ;;  %v1441_v25 = vld [vmem:[%s2455_s0 + $0x178] sm:$0xf]  ;;  %v1621_v26 = vld [vmem:[%s2455_s0 + $0x198] sm:$0x10]  ;;  %v1434_v29 = vor.u32 %v1620_v22, %v1433_v21 }
  0x1f   :  { %1263 = vmatmul.msk.bf16.vlgmr.msrb.gmra.mxu2 %vm125_vm2, %v1739_v37  ;;  %479 = vmatpush.bf16.msrb.mxu1 %v403_v41  ;;  %v1617_v27 = vld [vmem:[%s2455_s0 + $0x17c] sm:$0xf]  ;;  %v1443_v28 = vld [vmem:[%s2455_s0 + $0x19c] sm:$0x10]  ;;  %v1438_v30 = vor.u32 %v1616_v23, %v1435_v24  ;;  %v1442_v31 = vor.u32 %v1621_v26, %v1441_v25  ;;  %v1397_v35 = vld [vmem:[%s2455_s0 + $0x128] sm:$0xf] }
  0x20   :  { %1264 = vmatmul.msk.bf16.vlgmr.msrb.gmra.mxu3 %vm125_vm2, %v1739_v37  ;;  %493 = vmatpush.bf16.msrb.mxu2 %v406_v44  ;;  %v1446_v32 = vor.u32 %v1617_v27, %v1443_v28  ;;  %v672_v33 = vand.u32 %v1434_v29, %v1673_v5  ;;  %v1611_v36 = vld [vmem:[%s2455_s0 + $0x148] sm:$0xf0]  ;;  %v1399_v40 = vld [vmem:[%s2455_s0 + $0x14c] sm:$0xf0]  ;;  %v1612_v43 = vld [vmem:[%s2455_s0 + $0x150] sm:$0xf0] }
  0x21   :  { %507 = vmatpush.bf16.msrb.mxu3 %v409_v47  ;;  %v675_v34 = vand.u32 %v1438_v30, %v1673_v5  ;;  %v678_v38 = vand.u32 %v1442_v31, %v1673_v5  ;;  %v1607_v39 = vld [vmem:[%s2455_s0 + $0x12c] sm:$0xf]  ;;  %v1405_v42 = vld [vmem:[%s2455_s0 + $0x130] sm:$0xf]  ;;  %v1608_v44 = vld [vmem:[%s2455_s0 + $0x134] sm:$0xf]  ;;  %v1398_v46 = vor.u32 %v1611_v36, %v1397_v35 }
  0x22   :  { %466 = vmatpush.bf16.msrb.mxu0 %v1301_v52  ;;  %v681_v41 = vand.u32 %v1446_v32, %v1673_v5  ;;  %v1407_v45 = vld [vmem:[%s2455_s0 + $0x154] sm:$0xf0]  ;;  %v1402_v47 = vor.u32 %v1607_v39, %v1399_v40  ;;  %v1406_v48 = vor.u32 %v1612_v43, %v1405_v42  ;;  %v1449_v50 = vld [vmem:[%s2455_s0 + $0x180] sm:$0xf]  ;;  %v1622_v51 = vld [vmem:[%s2455_s0 + $0x1a0] sm:$0x10] }
  0x23   :  { %480 = vmatpush.bf16.msrb.mxu1 %v1305_v53  ;;  %v1410_v49 = vor.u32 %v1608_v44, %v1407_v45  ;;  %v1618_v52 = vld [vmem:[%s2455_s0 + $0x184] sm:$0xf]  ;;  %v1451_v53 = vld [vmem:[%s2455_s0 + $0x1a4] sm:$0x10]  ;;  %v1526_v56 = vld [vmem:[%s2455_s0 + $0x1f8] sm:$0xf]  ;;  %v1450_v58 = vor.u32 %v1622_v51, %v1449_v50 }
  0x24   :  { %494 = vmatpush.bf16.msrb.mxu2 %v1309_v54  ;;  %v1457_v54 = vld [vmem:[%s2455_s0 + $0x188] sm:$0xf]  ;;  %v1637_v57 = vld [vmem:[%s2455_s0 + $0x218] sm:$0x10]  ;;  %v1454_v59 = vor.u32 %v1618_v52, %v1451_v53  ;;  %v1413_v0 = vld [vmem:[%s2455_s0 + $0x138] sm:$0xf] }
  0x25   :  { %508 = vmatpush.bf16.msrb.mxu3 %v1313_v55  ;;  %v1623_v55 = vld [vmem:[%s2455_s0 + $0x1a8] sm:$0x10]  ;;  %v1527_v61 = vor.u32 %v1637_v57, %v1526_v56  ;;  %v684_v62 = vand.u32 %v1450_v58, %v1673_v5  ;;  %v1613_v1 = vld [vmem:[%s2455_s0 + $0x158] sm:$0xf0]  ;;  %v1421_v7 = vld [vmem:[%s2455_s0 + $0x140] sm:$0xf] }
  0x26   :  { %v1458_v60 = vor.u32 %v1623_v55, %v1457_v54  ;;  %v687_v63 = vand.u32 %v1454_v59, %v1673_v5  ;;  %v1609_v3 = vld [vmem:[%s2455_s0 + $0x13c] sm:$0xf]  ;;  %v1614_v8 = vld [vmem:[%s2455_s0 + $0x160] sm:$0xf0]  ;;  %v1628_v10 = vld [vmem:[%s2455_s0 + $0x1d0] sm:$0xf0]  ;;  %v1414_v11 = vor.u32 %v1613_v1, %v1413_v0 }
  0x27   :  { %v1422_v13 = vor.u32 %v1614_v8, %v1421_v7  ;;  %v1633_v15 = vld [vmem:[%s2455_s0 + $0x1fc] sm:$0xf]  ;;  %v1528_v16 = vld [vmem:[%s2455_s0 + $0x21c] sm:$0x10]  ;;  %v1542_v21 = vld [vmem:[%s2455_s0 + $0x208] sm:$0xf] }
  0x28   :  { %v690_v2 = vand.u32 %v1458_v60, %v1673_v5  ;;  %v1639_v22 = vld [vmem:[%s2455_s0 + $0x228] sm:$0x10]  ;;  %v1531_v23 = vor.u32 %v1633_v15, %v1528_v16  ;;  %v1624_v29 = vld [vmem:[%s2455_s0 + $0x1b4] sm:$0xf]  ;;  %v1492_v30 = vld [vmem:[%s2455_s0 + $0x1d4] sm:$0xf0] }
  0x29   :  { %v1543_v26 = vor.u32 %v1639_v22, %v1542_v21  ;;  %v1498_v32 = vld [vmem:[%s2455_s0 + $0x1b8] sm:$0xf]  ;;  %v1625_v35 = vld [vmem:[%s2455_s0 + $0x1bc] sm:$0xf]  ;;  %v1500_v36 = vld [vmem:[%s2455_s0 + $0x1dc] sm:$0xf0]  ;;  %v1495_v40 = vor.u32 %v1624_v29, %v1492_v30 }
  0x2a   :  { %v944_v27 = vand.u32 %v1531_v23, %v1673_v5  ;;  %v1630_v39 = vld [vmem:[%s2455_s0 + $0x1e0] sm:$0xf0]  ;;  %v1503_v42 = vor.u32 %v1625_v35, %v1500_v36  ;;  %v1646_v45 = vmov 0   ;;  %v1636_v50 = vld [vmem:[%s2455_s0 + $0x214] sm:$0xf] }
  0x2b   :  { %v1111_v44 = vld [vmem:[%s2457_s2] sm:$0xff]  ;;  %1644 = vset.pattern.permute.xlu0 %v1646_v45  ;;  %v1552_v51 = vld [vmem:[%s2455_s0 + $0x234] sm:$0x10]  ;;  %v1641_v53 = vld [vmem:[%s2455_s0 + $0x238] sm:$0x10] }
  0x2c   :  { %1115 = vperm.xlu0 %1644, %v1111_v44   ;;  %v1558_v52 = vld [vmem:[%s2455_s0 + $0x218] sm:$0xf]  ;;  %v1555_v56 = vor.u32 %v1636_v50, %v1552_v51  ;;  %v1112_v57 = vld [vmem:[%s2457_s2 + $0x8] sm:$0x3]  ;;  %v1631_v1 = vld [vmem:[%s2455_s0 + $0x1e8] sm:$0xf0] }
  0x2d   :  { %1265 = vmatmul.msk.bf16.vlgmr.msra.gmra.mxu0 %vm125_vm2, %v1739_v37  ;;  %v1559_v58 = vor.u32 %v1641_v53, %v1558_v52  ;;  %v1514_v0 = vld [vmem:[%s2455_s0 + $0x1c8] sm:$0xf] }
  0x2e   :  { %1358 = vmatmul.msk.bf16.vlgmr.msra.gmra.mxu1 %vm125_vm2, %v1739_v37  ;;  %521 = vmatpush.bf16.msra.mxu0 %v412_v4  ;;  %v1415_v4 = vld [vmem:[%s2455_s0 + $0x15c] sm:$0xf0]  ;;  %v1515_v8 = vor.u32 %v1631_v1, %v1514_v0 }
  0x2f   :  { %1359 = vmatmul.msk.bf16.vlgmr.msra.gmra.mxu2 %vm125_vm2, %v1739_v37  ;;  %535 = vmatpush.bf16.msra.mxu1 %v415_v6  ;;  %v941_v6 = vand.u32 %v1527_v61, %v1673_v5  ;;  %v1626_v61 = vld [vmem:[%s2455_s0 + $0x1c4] sm:$0xf] }
  0x30   :  { %1360 = vmatmul.msk.bf16.vlgmr.msra.gmra.mxu3 %vm125_vm2, %v1739_v37  ;;  %698 = vmatpush.bf16.msra.mxu2 %v666_v9  ;;  %v1490_v9 = vld [vmem:[%s2455_s0 + $0x1b0] sm:$0xf] }
  0x31   :  { %712 = vmatpush.bf16.msra.mxu3 %v669_v12  ;;  %v1418_v12 = vor.u32 %v1609_v3, %v1415_v4  ;;  %v1491_v14 = vor.u32 %v1628_v10, %v1490_v9  ;;  %v1627_v3 = vld [vmem:[%s2455_s0 + $0x1cc] sm:$0xf]  ;;  %v1516_v4 = vld [vmem:[%s2455_s0 + $0x1ec] sm:$0xf0] }
  0x32   :  { %522 = vmatpush.bf16.msra.mxu0 %v1317_v17  ;;  %v1534_v17 = vld [vmem:[%s2455_s0 + $0x200] sm:$0xf]  ;;  %v1519_v9 = vor.u32 %v1627_v3, %v1516_v4 }
  0x33   :  { %536 = vmatpush.bf16.msra.mxu1 %v1321_v18  ;;  %v1638_v18 = vld [vmem:[%s2455_s0 + $0x220] sm:$0x10] }
  0x34   :  { %699 = vmatpush.bf16.msra.mxu2 %v1390_v19  ;;  %v1634_v19 = vld [vmem:[%s2455_s0 + $0x204] sm:$0xf]  ;;  %v1535_v24 = vor.u32 %v1638_v18, %v1534_v17  ;;  %1120 = vperm.xlu0 %1644, %v1112_v57  }
  0x35   :  { %713 = vmatpush.bf16.msra.mxu3 %v1394_v20  ;;  %v1536_v20 = vld [vmem:[%s2455_s0 + $0x224] sm:$0x10] }
  0x36   :  { %v1539_v25 = vor.u32 %v1634_v19, %v1536_v20  ;;  %v947_v28 = vand.u32 %v1535_v24, %v1673_v5 }
  0x38   :  { %v950_v31 = vand.u32 %v1539_v25, %v1673_v5 }
  0x3d   :  { %1361 = vmatmul.msk.bf16.vlgmr.msrb.gmra.mxu0 %vm125_vm2, %v1739_v37 }
  0x3e   :  { %1362 = vmatmul.msk.bf16.vlgmr.msrb.gmra.mxu1 %vm125_vm2, %v1739_v37  ;;  %726 = vmatpush.bf16.msrb.mxu0 %v672_v33  ;;  %v1629_v33 = vld [vmem:[%s2455_s0 + $0x1d8] sm:$0xf0] }
  0x3f   :  { %1363 = vmatmul.msk.bf16.vlgmr.msrb.gmra.mxu2 %vm125_vm2, %v1739_v37  ;;  %740 = vmatpush.bf16.msrb.mxu1 %v675_v34  ;;  %v953_v34 = vand.u32 %v1543_v26, %v1673_v5 }
  0x40   :  { %1364 = vmatmul.msk.bf16.vlgmr.msrb.gmra.mxu3 %vm125_vm2, %v1739_v37  ;;  %754 = vmatpush.bf16.msrb.mxu2 %v678_v38  ;;  %v1506_v38 = vld [vmem:[%s2455_s0 + $0x1c0] sm:$0xf] }
  0x41   :  { %768 = vmatpush.bf16.msrb.mxu3 %v681_v41  ;;  %v1499_v41 = vor.u32 %v1629_v33, %v1498_v32  ;;  %v1507_v43 = vor.u32 %v1630_v39, %v1506_v38 }
  0x42   :  { %727 = vmatpush.bf16.msrb.mxu0 %v1398_v46  ;;  %v1635_v46 = vld [vmem:[%s2455_s0 + $0x20c] sm:$0xf] }
  0x43   :  { %741 = vmatpush.bf16.msrb.mxu1 %v1402_v47  ;;  %v1544_v47 = vld [vmem:[%s2455_s0 + $0x22c] sm:$0x10] }
  0x44   :  { %755 = vmatpush.bf16.msrb.mxu2 %v1406_v48  ;;  %v1550_v48 = vld [vmem:[%s2455_s0 + $0x210] sm:$0xf]  ;;  %v1547_v54 = vor.u32 %v1635_v46, %v1544_v47 }
  0x45   :  { %769 = vmatpush.bf16.msrb.mxu3 %v1410_v49  ;;  %v1640_v49 = vld [vmem:[%s2455_s0 + $0x230] sm:$0x10] }
  0x46   :  { %v1551_v55 = vor.u32 %v1640_v49, %v1550_v48  ;;  %v956_v59 = vand.u32 %v1547_v54, %v1673_v5 }
  0x48   :  { %v959_v60 = vand.u32 %v1551_v55, %v1673_v5 }
  0x4d   :  { %1365 = vmatmul.msk.bf16.vlgmr.msra.gmra.mxu0 %vm125_vm2, %v1739_v37 }
  0x4e   :  { %1366 = vmatmul.msk.bf16.vlgmr.msra.gmra.mxu1 %vm125_vm2, %v1739_v37  ;;  %782 = vmatpush.bf16.msra.mxu0 %v684_v62  ;;  %v1508_v62 = vld [vmem:[%s2455_s0 + $0x1e4] sm:$0xf0] }
  0x4f   :  { %1459 = vmatmul.msk.bf16.vlgmr.msra.gmra.mxu2 %vm125_vm2, %v1739_v37  ;;  %796 = vmatpush.bf16.msra.mxu1 %v687_v63  ;;  %v962_v63 = vand.u32 %v1555_v56, %v1673_v5  ;;  %v1511_v7 = vor.u32 %v1626_v61, %v1508_v62 }
  0x50   :  { %1460 = vmatmul.msk.bf16.vlgmr.msra.gmra.mxu3 %vm125_vm2, %v1739_v37  ;;  %810 = vmatpush.bf16.msra.mxu2 %v690_v2  ;;  %v965_v2 = vand.u32 %v1559_v58, %v1673_v5  ;;  %v1632_v5 = vld [vmem:[%s2455_s0 + $0x1f0] sm:$0xf0] }
  0x51   :  { %973 = vmatpush.bf16.msra.mxu3 %v941_v6  ;;  %v1522_v6 = vld [vmem:[%s2455_s0 + $0x1d0] sm:$0xf] }
  0x52   :  { %783 = vmatpush.bf16.msra.mxu0 %v1414_v11  ;;  %v1523_v10 = vor.u32 %v1632_v5, %v1522_v6 }
  0x53   :  { %797 = vmatpush.bf16.msra.mxu1 %v1418_v12 }
  0x54   :  { %811 = vmatpush.bf16.msra.mxu2 %v1422_v13 }
  0x55   :  { %974 = vmatpush.bf16.msra.mxu3 %v1491_v14 }
  0x5d   :  { %1461 = vmatmul.msk.bf16.vlgmr.msrb.gmra.mxu0 %vm125_vm2, %v1739_v37 }
  0x5e   :  { %1462 = vmatmul.msk.bf16.vlgmr.msrb.gmra.mxu1 %vm125_vm2, %v1739_v37  ;;  %987 = vmatpush.bf16.msrb.mxu0 %v944_v27 }
  0x5f   :  { %1463 = vmatmul.msk.bf16.vlgmr.msrb.gmra.mxu2 %vm125_vm2, %v1739_v37  ;;  %1001 = vmatpush.bf16.msrb.mxu1 %v947_v28 }
  0x60   :  { %1464 = vmatmul.msk.bf16.vlgmr.msrb.gmra.mxu3 %vm125_vm2, %v1739_v37  ;;  %1015 = vmatpush.bf16.msrb.mxu2 %v950_v31 }
  0x61   :  { %1029 = vmatpush.bf16.msrb.mxu3 %v953_v34 }
  0x62   :  { %988 = vmatpush.bf16.msrb.mxu0 %v1495_v40 }
  0x63   :  { %1002 = vmatpush.bf16.msrb.mxu1 %v1499_v41 }
  0x64   :  { %1016 = vmatpush.bf16.msrb.mxu2 %v1503_v42 }
  0x65   :  { %1030 = vmatpush.bf16.msrb.mxu3 %v1507_v43 }
  0x6d   :  { %1465 = vmatmul.msk.bf16.vlgmr.msra.gmra.mxu0 %vm125_vm2, %v1739_v37 }
  0x6e   :  { %1466 = vmatmul.msk.bf16.vlgmr.msra.gmra.mxu1 %vm125_vm2, %v1739_v37  ;;  %1043 = vmatpush.bf16.msra.mxu0 %v956_v59 }
  0x6f   :  { %1467 = vmatmul.msk.bf16.vlgmr.msra.gmra.mxu2 %vm125_vm2, %v1739_v37  ;;  %1057 = vmatpush.bf16.msra.mxu1 %v959_v60 }
  0x70   :  { %1560 = vmatmul.msk.bf16.vlgmr.msra.gmra.mxu3 %vm125_vm2, %v1739_v37  ;;  %1071 = vmatpush.bf16.msra.mxu2 %v962_v63 }
  0x71   :  { %1085 = vmatpush.bf16.msra.mxu3 %v965_v2 }
  0x72   :  { %1044 = vmatpush.bf16.msra.mxu0 %v1511_v7 }
  0x73   :  { %1058 = vmatpush.bf16.msra.mxu1 %v1515_v8 }
  0x74   :  { %1072 = vmatpush.bf16.msra.mxu2 %v1519_v9 }
  0x75   :  { %1086 = vmatpush.bf16.msra.mxu3 %v1523_v10 }
  0x7d   :  { %1561 = vmatmul.msk.bf16.vlgmr.msrb.gmra.mxu0 %vm125_vm2, %v1739_v37 }
  0x7e   :  { %1562 = vmatmul.msk.bf16.vlgmr.msrb.gmra.mxu1 %vm125_vm2, %v1739_v37 }
  0x7f   :  { %1563 = vmatmul.msk.bf16.vlgmr.msrb.gmra.mxu2 %vm125_vm2, %v1739_v37 }
  0x80   :  { %1564 = vmatmul.msk.bf16.vlgmr.msrb.gmra.mxu3 %vm125_vm2, %v1739_v37 }
  0x8a   :  { %v2215_v11 = vpop.f32.mrf.mxu0 }
  0x8b   :  { %v2217_v12 = vpop.f32.mrf.mxu1 }
  0x8d   :  { %1565 = vmatmul.msk.bf16.vlgmr.msra.gmra.mxu0 %vm125_vm2, %v1739_v37 }
  0x8e   :  { %1566 = vmatmul.msk.bf16.vlgmr.msra.gmra.mxu1 %vm125_vm2, %v1739_v37 }
  0x8f   :  { %1567 = vmatmul.msk.bf16.vlgmr.msra.gmra.mxu2 %vm125_vm2, %v1739_v37 }
  0x90   :  { %1568 = vmatmul.msk.bf16.vlgmr.msra.gmra.mxu3 %vm125_vm2, %v1739_v37 }
  0x92   :  { %v2227_v13 = vpop.f32.mrf.mxu2  ;;  %v2229_v14 = vpop.f32.mrf.mxu0 }
  0x93   :  { %v2231_v15 = vpop.f32.mrf.mxu3  ;;  %v2233_v16 = vpop.f32.mrf.mxu1 }
  0x9a   :  { %v2235_v17 = vpop.f32.mrf.mxu2  ;;  %v2237_v18 = vpop.f32.mrf.mxu0 }
  0x9b   :  { %v2239_v19 = vpop.f32.mrf.mxu3  ;;  %v2241_v20 = vpop.f32.mrf.mxu1 }
  0xa2   :  { %v2243_v21 = vpop.f32.mrf.mxu2  ;;  %v2245_v22 = vpop.f32.mrf.mxu0 }
  0xa3   :  { %v2247_v37 = vpop.f32.mrf.mxu3  ;;  %v2249_v23 = vpop.f32.mrf.mxu1 }
  0xaa   :  { %v2251_v24 = vpop.f32.mrf.mxu2  ;;  %v2253_v25 = vpop.f32.mrf.mxu0 }
  0xab   :  { %v2255_v26 = vpop.f32.mrf.mxu3  ;;  %v426_v27 = vpop.f32.mrf.mxu1 }
  0xac   :  { %v543_v28 = vmax.f32 %v2215_v11, %v426_v27  ;;  %v2323_v27 = vpop.permute.xlu0 %1115 }
  0xb2   :  { %v440_v29 = vpop.f32.mrf.mxu2  ;;  %v2258_v30 = vpop.f32.mrf.mxu0 }
  0xb3   :  { %v544_v31 = vmax.f32 %v2217_v12, %v440_v29  ;;  %v454_v32 = vpop.f32.mrf.mxu3  ;;  %v428_v33 = vpop.f32.mrf.mxu1 }
  0xb4   :  { %v545_v34 = vmax.f32 %v2227_v13, %v454_v32  ;;  %v552_v35 = vmax.f32 %v2229_v14, %v428_v33  ;;  %v2332_v51 = vpop.permute.xlu0 %1120 }
  0xba   :  { %v2263_v36 = vpop.f32.mrf.mxu2  ;;  %v2265_v38 = vpop.f32.mrf.mxu0 }
  0xbb   :  { %v553_v39 = vmax.f32 %v2233_v16, %v2263_v36  ;;  %v2269_v40 = vpop.f32.mrf.mxu3  ;;  %v2273_v42 = vpop.f32.mrf.mxu1 }
  0xc2   :  { %v2279_v45 = vpop.f32.mrf.mxu2  ;;  %v2281_v46 = vpop.f32.mrf.mxu0 }
  0xc3   :  { %v2285_v48 = vpop.f32.mrf.mxu3  ;;  %v2289_v50 = vpop.f32.mrf.mxu1 }
  0xca   :  { %v2295_v53 = vpop.f32.mrf.mxu2  ;;  %v2297_v54 = vpop.f32.mrf.mxu0 }
  0xcb   :  { %v2301_v56 = vpop.f32.mrf.mxu3  ;;  %v2305_v58 = vpop.f32.mrf.mxu1 }
  0xd2   :  { %v701_v61 = vpop.f32.mrf.mxu2  ;;  %v2311_v62 = vpop.f32.mrf.mxu0 }
  0xd3   :  { %v715_v63 = vpop.f32.mrf.mxu3  ;;  %v2315_v1 = vpop.f32.mrf.mxu1  ;;  %v818_v29 = vmax.f32 %v543_v28, %v701_v61 }
  0xd4   :  { %v819_v55 = vmax.f32 %v544_v31, %v715_v63 }
  0xda   :  { %v703_v3 = vpop.f32.mrf.mxu2  ;;  %v729_v4 = vpop.f32.mrf.mxu0 }
  0xdb   :  { %v717_v6 = vpop.f32.mrf.mxu3  ;;  %v743_v5 = vpop.f32.mrf.mxu1  ;;  %v827_v52 = vmax.f32 %v552_v35, %v703_v3  ;;  %v820_v49 = vmax.f32 %v545_v34, %v729_v4  ;;  %v2459_v3 = vmax.f32 %v2231_v15, %v2265_v38 }
  0xe2   :  { %v757_v7 = vpop.f32.mrf.mxu2  ;;  %v731_v8 = vpop.f32.mrf.mxu0 }
  0xe3   :  { %v771_v9 = vpop.f32.mrf.mxu3  ;;  %v745_v10 = vpop.f32.mrf.mxu1 }
  0xea   :  { %v759_v11 = vpop.f32.mrf.mxu2  ;;  %v785_v12 = vpop.f32.mrf.mxu0 }
  0xeb   :  { %v2319_v13 = vpop.f32.mrf.mxu3  ;;  %v2321_v14 = vpop.f32.mrf.mxu1 }
  0xf2   :  { %v2325_v32 = vpop.f32.mrf.mxu2  ;;  %v2327_v33 = vpop.f32.mrf.mxu0 }
  0xf3   :  { %v976_v2 = vpop.f32.mrf.mxu3  ;;  %v2329_v0 = vpop.f32.mrf.mxu1 }
  0xf4   :  { %v1093_v59 = vmax.f32 %v818_v29, %v976_v2  ;;  %v2462_v29 = vmax.f32 %v2241_v20, %v2279_v45 }
  0xf6   :  { %v1123_v60 = vadd.f32 %v2323_v27, %v1093_v59 }
  0xf8   :  { %v1141_v57 = vmax.f32 %v1123_v60, 0.0 }
  0xfa   :  { %1159 = vst [vmem:[%s2458_s3] sm:$0xff] %v1141_v57  ;;  %v2337_v28 = vpop.f32.mrf.mxu2  ;;  %v990_v61 = vpop.f32.mrf.mxu0  ;;  %v828_v57 = vmax.f32 %v553_v39, %v717_v6 }
  0xfb   :  { %v978_v47 = vpop.f32.mrf.mxu3  ;;  %v1094_v43 = vmax.f32 %v819_v55, %v990_v61  ;;  %v1004_v44 = vpop.f32.mrf.mxu1  ;;  %v821_v55 = vmax.f32 %v2459_v3, %v743_v5  ;;  %v823_v61 = vmax.f32 %v2462_v29, %v771_v9 }
  0xfc   :  { %v1102_v41 = vmax.f32 %v827_v52, %v978_v47  ;;  %v1095_v2 = vmax.f32 %v820_v49, %v1004_v44  ;;  %v2461_v44 = vmax.f32 %v2235_v17, %v2269_v40 }
  0xfd   :  { %v1124_v59 = vadd.f32 %v2323_v27, %v1094_v43 }
  0xfe   :  { %v1132_v31 = vadd.f32 %v2332_v51, %v1102_v41  ;;  %v1125_v60 = vadd.f32 %v2323_v27, %v1095_v2  ;;  %v2460_v41 = vmax.f32 %v2237_v18, %v2273_v42  ;;  %v829_v47 = vmax.f32 %v2461_v44, %v731_v8 }
  0xff   :  { %v1142_v35 = vmax.f32 %v1124_v59, 0.0  ;;  %v2463_v2 = vmax.f32 %v2239_v19, %v2281_v46  ;;  %v2467_v44 = vmax.f32 %v2247_v37, %v2297_v54 }
 0x100   :  { %v1150_v34 = vmax.f32 %v1132_v31, 0.0  ;;  %v1143_v63 = vmax.f32 %v1125_v60, 0.0  ;;  %v822_v43 = vmax.f32 %v2460_v41, %v757_v7  ;;  %v2464_v31 = vmax.f32 %v2245_v22, %v2289_v50 }
 0x101   :  { %1160 = vst [vmem:[%s2458_s3 + $0x8] sm:$0xff] %v1142_v35  ;;  %v830_v59 = vmax.f32 %v2463_v2, %v745_v10  ;;  %v2465_v35 = vmax.f32 %v2243_v21, %v2285_v48  ;;  %v2466_v41 = vmax.f32 %v2249_v23, %v2295_v53 }
 0x102   :  { %1168 = vst [vmem:[%s2458_s3 + $0x48] sm:$0x3] %v1150_v34  ;;  %v1018_v16 = vpop.f32.mrf.mxu2  ;;  %v992_v36 = vpop.f32.mrf.mxu0  ;;  %v831_v60 = vmax.f32 %v2464_v31, %v759_v11 }
 0x103   :  { %1161 = vst [vmem:[%s2458_s3 + $0x10] sm:$0xff] %v1143_v63  ;;  %v1096_v15 = vmax.f32 %v821_v55, %v1018_v16  ;;  %v1032_v38 = vpop.f32.mrf.mxu3  ;;  %v1103_v39 = vmax.f32 %v828_v57, %v992_v36  ;;  %v1006_v49 = vpop.f32.mrf.mxu1  ;;  %v824_v34 = vmax.f32 %v2465_v35, %v785_v12  ;;  %v2468_v16 = vmax.f32 %v2253_v25, %v2305_v58 }
 0x104   :  { %v1097_v18 = vmax.f32 %v822_v43, %v1032_v38  ;;  %v1104_v42 = vmax.f32 %v829_v47, %v1006_v49  ;;  %v832_v43 = vmax.f32 %v2466_v41, %v2319_v13  ;;  %v825_v47 = vmax.f32 %v2467_v44, %v2321_v14 }
 0x105   :  { %v1126_v52 = vadd.f32 %v2323_v27, %v1096_v15  ;;  %v1133_v17 = vadd.f32 %v2332_v51, %v1103_v39  ;;  %v826_v36 = vmax.f32 %v2468_v16, %v2325_v32  ;;  %v2469_v15 = vmax.f32 %v2251_v24, %v2301_v56 }
 0x106   :  { %v1127_v40 = vadd.f32 %v2323_v27, %v1097_v18  ;;  %v1134_v4 = vadd.f32 %v2332_v51, %v1104_v42 }
 0x107   :  { %v1144_v6 = vmax.f32 %v1126_v52, 0.0  ;;  %v1151_v5 = vmax.f32 %v1133_v17, 0.0  ;;  %v833_v23 = vmax.f32 %v2469_v15, %v2327_v33  ;;  %v2470_v52 = vmax.f32 %v2255_v26, %v2311_v62 }
 0x108   :  { %v1145_v7 = vmax.f32 %v1127_v40, 0.0  ;;  %v1152_v8 = vmax.f32 %v1134_v4, 0.0  ;;  %v2471_v40 = vmax.f32 %v2258_v30, %v2315_v1 }
 0x109   :  { %1162 = vst [vmem:[%s2458_s3 + $0x18] sm:$0xff] %v1144_v6  ;;  %v834_v17 = vmax.f32 %v2470_v52, %v2329_v0 }
 0x10a   :  { %1163 = vst [vmem:[%s2458_s3 + $0x20] sm:$0xff] %v1145_v7  ;;  %v1020_v20 = vpop.f32.mrf.mxu2  ;;  %v1046_v45 = vpop.f32.mrf.mxu0 }
 0x10b   :  { %1169 = vst [vmem:[%s2458_s3 + $0x50] sm:$0x3] %v1151_v5  ;;  %v1105_v19 = vmax.f32 %v830_v59, %v1020_v20  ;;  %v1034_v46 = vpop.f32.mrf.mxu3  ;;  %v1098_v9 = vmax.f32 %v823_v61, %v1046_v45  ;;  %v1060_v10 = vpop.f32.mrf.mxu1 }
 0x10c   :  { %1170 = vst [vmem:[%s2458_s3 + $0x58] sm:$0x3] %v1152_v8  ;;  %v1106_v21 = vmax.f32 %v831_v60, %v1034_v46  ;;  %v1099_v22 = vmax.f32 %v824_v34, %v1060_v10 }
 0x10d   :  { %v1135_v48 = vadd.f32 %v2332_v51, %v1105_v19  ;;  %v1128_v50 = vadd.f32 %v2323_v27, %v1098_v9 }
 0x10e   :  { %v1136_v11 = vadd.f32 %v2332_v51, %v1106_v21  ;;  %v1129_v12 = vadd.f32 %v2323_v27, %v1099_v22 }
 0x10f   :  { %v1153_v63 = vmax.f32 %v1135_v48, 0.0  ;;  %v1146_v57 = vmax.f32 %v1128_v50, 0.0 }
 0x110   :  { %v1154_v3 = vmax.f32 %v1136_v11, 0.0  ;;  %v1147_v55 = vmax.f32 %v1129_v12, 0.0 }
 0x111   :  { %1171 = vst [vmem:[%s2458_s3 + $0x60] sm:$0x3] %v1153_v63 }
 0x112   :  { %1172 = vst [vmem:[%s2458_s3 + $0x68] sm:$0x3] %v1154_v3  ;;  %v1074_v37 = vpop.f32.mrf.mxu2  ;;  %v1048_v53 = vpop.f32.mrf.mxu0 }
 0x113   :  { %1164 = vst [vmem:[%s2458_s3 + $0x28] sm:$0xff] %v1146_v57  ;;  %v1100_v54 = vmax.f32 %v825_v47, %v1074_v37  ;;  %v1088_v13 = vpop.f32.mrf.mxu3  ;;  %v1107_v14 = vmax.f32 %v832_v43, %v1048_v53  ;;  %v1062_v25 = vpop.f32.mrf.mxu1 }
 0x114   :  { %1165 = vst [vmem:[%s2458_s3 + $0x30] sm:$0xff] %v1147_v55  ;;  %v1101_v24 = vmax.f32 %v826_v36, %v1088_v13  ;;  %v1108_v56 = vmax.f32 %v833_v23, %v1062_v25 }
 0x115   :  { %v1130_v58 = vadd.f32 %v2323_v27, %v1100_v54  ;;  %v1137_v32 = vadd.f32 %v2332_v51, %v1107_v14 }
 0x116   :  { %v1131_v33 = vadd.f32 %v2323_v27, %v1101_v24  ;;  %v1138_v38 = vadd.f32 %v2332_v51, %v1108_v56  ;;  %v835_v27 = vmax.f32 %v2471_v40, %v2337_v28 }
 0x117   :  { %v1148_v39 = vmax.f32 %v1130_v58, 0.0  ;;  %v1155_v49 = vmax.f32 %v1137_v32, 0.0 }
 0x118   :  { %v1149_v18 = vmax.f32 %v1131_v33, 0.0  ;;  %v1156_v42 = vmax.f32 %v1138_v38, 0.0 }
 0x119   :  { %1166 = vst [vmem:[%s2458_s3 + $0x38] sm:$0xff] %v1148_v39 }
 0x11a   :  { %1167 = vst [vmem:[%s2458_s3 + $0x40] sm:$0xff] %v1149_v18  ;;  %v1076_v4 = vpop.f32.mrf.mxu2 }
 0x11b   :  { %1173 = vst [vmem:[%s2458_s3 + $0x70] sm:$0x3] %v1155_v49  ;;  %v1109_v26 = vmax.f32 %v834_v17, %v1076_v4  ;;  %v1090_v62 = vpop.f32.mrf.mxu3 }
 0x11c   :  { %1174 = vst [vmem:[%s2458_s3 + $0x78] sm:$0x3] %v1156_v42  ;;  %v1110_v0 = vmax.f32 %v835_v27, %v1090_v62 }
 0x11d   :  { %v1139_v6 = vadd.f32 %v2332_v51, %v1109_v26 }
 0x11e   :  { %v1140_v30 = vadd.f32 %v2332_v51, %v1110_v0 }
 0x11f   :  { %v1157_v1 = vmax.f32 %v1139_v6, 0.0 }
 0x120   :  { %v1158_v28 = vmax.f32 %v1140_v30, 0.0 }
 0x121   :  { %1175 = vst [vmem:[%s2458_s3 + $0x80] sm:$0x3] %v1157_v1 }
 0x122   :  { %1176 = vst [vmem:[%s2458_s3 + $0x88] sm:$0x3] %v1158_v28 }

// kernel: net_forward.4
= control target key start
LH: loop header
LB: loop body
LE: loop exit
PB: predicated region body
PF: predicated region fallthrough
CT: control target
= control target key end

     0   :  { %vm166_vm0 = vcmask 1044480   ;;  %vm159_vm1 = vcmask 998400   ;;  %s1466_s0 = inlined_call_operand.vmem [shape: bf16[4,250,128], index: 0, kind: input, shape index: {}]   ;;  %s1467_s1 = inlined_call_operand.vmem [shape: bf16[20,250], index: 1, kind: input, shape index: {}]   ;;  %s1468_s2 = inlined_call_operand.vmem [shape: f32[20,1], index: 2, kind: input, shape index: {}]   ;;  %s1469_s3 = inlined_call_operand.vmem [shape: f32[20,128], index: 3, kind: output, shape index: {}]  }
   0x1   :  { %v1124_v0 = vld [vmem:[%s1466_s0 + $0x38] sm:$0xff]  ;;  %v1123_v8 = vld [vmem:[%s1466_s0 + $0x30] sm:$0xff]  ;;  %v1122_v14 = vld [vmem:[%s1466_s0 + $0x28] sm:$0xff] }
   0x2   :  { %v1140_v1 = vld [vmem:[%s1466_s0 + $0xb8] sm:$0xff]  ;;  %170 = vmatpush.bf16.msra.mxu0 %v1124_v0  ;;  %v1139_v9 = vld [vmem:[%s1466_s0 + $0xb0] sm:$0xff]  ;;  %v1138_v15 = vld [vmem:[%s1466_s0 + $0xa8] sm:$0xff] }
   0x3   :  { %v817_v2 = vld [vmem:[%s1466_s0 + $0x78] sm:$0xf]  ;;  %v1132_v3 = vld [vmem:[%s1466_s0 + $0x78] sm:$0x10]  ;;  %337 = vmatpush.bf16.msra.mxu2 %v1140_v1  ;;  %v1131_v12 = vld [vmem:[%s1466_s0 + $0x70] sm:$0xff] }
   0x4   :  { %v915_v4 = vld [vmem:[%s1466_s0 + $0xf8] sm:$0xf]  ;;  %v1148_v5 = vld [vmem:[%s1466_s0 + $0xf8] sm:$0x10]  ;;  %v818_v6 = vor.u32 %v1132_v3, %v817_v2  ;;  %v1147_v13 = vld [vmem:[%s1466_s0 + $0xf0] sm:$0xff] }
   0x5   :  { %v916_v7 = vor.u32 %v1148_v5, %v915_v4  ;;  %v1130_v16 = vld [vmem:[%s1466_s0 + $0x68] sm:$0xff]  ;;  %v1121_v18 = vld [vmem:[%s1466_s0 + $0x20] sm:$0xff]  ;;  %v1120_v22 = vld [vmem:[%s1466_s0 + $0x18] sm:$0xff] }
   0x6   :  { %v168_v10 = vsel %vm166_vm0, %v818_v6, 0  ;;  %171 = vmatpush.bf16.msra.mxu0 %v1123_v8  ;;  %v1146_v17 = vld [vmem:[%s1466_s0 + $0xe8] sm:$0xff]  ;;  %v1137_v19 = vld [vmem:[%s1466_s0 + $0xa0] sm:$0xff]  ;;  %v1136_v23 = vld [vmem:[%s1466_s0 + $0x98] sm:$0xff] }
   0x7   :  { %v335_v11 = vsel %vm166_vm0, %v916_v7, 0  ;;  %188 = vmatpush.bf16.msra.mxu1 %v168_v10  ;;  %338 = vmatpush.bf16.msra.mxu2 %v1139_v9  ;;  %v1129_v20 = vld [vmem:[%s1466_s0 + $0x60] sm:$0xff]  ;;  %v1128_v24 = vld [vmem:[%s1466_s0 + $0x58] sm:$0xff]  ;;  %v1119_v26 = vld [vmem:[%s1466_s0 + $0x10] sm:$0xff] }
   0x8   :  { %355 = vmatpush.bf16.msra.mxu3 %v335_v11  ;;  %v1145_v21 = vld [vmem:[%s1466_s0 + $0xe0] sm:$0xff]  ;;  %v1144_v25 = vld [vmem:[%s1466_s0 + $0xd8] sm:$0xff]  ;;  %v1135_v27 = vld [vmem:[%s1466_s0 + $0x90] sm:$0xff] }
   0x9   :  { %v1127_v28 = vld [vmem:[%s1466_s0 + $0x50] sm:$0xff]  ;;  %v1118_v30 = vld [vmem:[%s1466_s0 + $0x8] sm:$0xff]  ;;  %v1111_v34 = vld [vmem:[%s1466_s0 + $0x1f8] sm:$0xf] }
   0xa   :  { %172 = vmatpush.bf16.msra.mxu0 %v1122_v14  ;;  %v1143_v29 = vld [vmem:[%s1466_s0 + $0xd0] sm:$0xff]  ;;  %v1134_v31 = vld [vmem:[%s1466_s0 + $0x88] sm:$0xff]  ;;  %v1180_v35 = vld [vmem:[%s1466_s0 + $0x1f8] sm:$0x10] }
   0xb   :  { %189 = vmatpush.bf16.msra.mxu1 %v1131_v12  ;;  %339 = vmatpush.bf16.msra.mxu2 %v1138_v15  ;;  %v1126_v32 = vld [vmem:[%s1466_s0 + $0x48] sm:$0xff]  ;;  %v1013_v36 = vld [vmem:[%s1466_s0 + $0x178] sm:$0xf]  ;;  %v1164_v37 = vld [vmem:[%s1466_s0 + $0x178] sm:$0x10]  ;;  %v1112_v45 = vor.u32 %v1180_v35, %v1111_v34 }
   0xc   :  { %356 = vmatpush.bf16.msra.mxu3 %v1147_v13  ;;  %v1142_v33 = vld [vmem:[%s1466_s0 + $0xc8] sm:$0xff]  ;;  %v1117_v38 = vld [vmem:[%s1466_s0] sm:$0xff]  ;;  %v1156_v42 = vld [vmem:[%s1466_s0 + $0x138] sm:$0xff]  ;;  %v1014_v46 = vor.u32 %v1164_v37, %v1013_v36 }
   0xd   :  { %v1133_v39 = vld [vmem:[%s1466_s0 + $0x80] sm:$0xff]  ;;  %v1116_v41 = vld [vmem:[%s1467_s1 + $0x4] sm:$0xf0]  ;;  %v1172_v43 = vld [vmem:[%s1466_s0 + $0x1b8] sm:$0xff]  ;;  %v675_v52 = vsel %vm166_vm0, %v1112_v45, 0 }
   0xe   :  { %173 = vmatpush.bf16.msra.mxu0 %v1121_v18  ;;  %v749_v40 = vld [vmem:[%s1467_s1] sm:$0xf]  ;;  %v1115_v48 = vld [vmem:[%s1467_s1 + $0x4] sm:$0xf]  ;;  %v751_v49 = vld [vmem:[%s1467_s1 + $0x8] sm:$0xf0] }
   0xf   :  { %190 = vmatpush.bf16.msra.mxu1 %v1130_v16  ;;  %340 = vmatpush.bf16.msra.mxu2 %v1137_v19  ;;  %v1125_v44 = vld [vmem:[%s1466_s0 + $0x40] sm:$0xff]  ;;  %v1339_v50 = vor.u32 %v1116_v41, %v749_v40  ;;  %v1341_v51 = vor.u32 %v1115_v48, %v751_v49  ;;  %v505_v53 = vsel %vm166_vm0, %v1014_v46, 0  ;;  %v1155_v54 = vld [vmem:[%s1466_s0 + $0x130] sm:$0xff]  ;;  %v1154_v58 = vld [vmem:[%s1466_s0 + $0x128] sm:$0xff]  ;;  %v1184_v19 = vmov 0  }
  0x10   :  { %357 = vmatpush.bf16.msra.mxu3 %v1146_v17  ;;  %v1141_v47 = vld [vmem:[%s1466_s0 + $0xc0] sm:$0xff]  ;;  %v1171_v55 = vld [vmem:[%s1466_s0 + $0x1b0] sm:$0xff]  ;;  %v1170_v59 = vld [vmem:[%s1466_s0 + $0x1a8] sm:$0xff]  ;;  %1182 = vset.pattern.permute.xlu0 %v1184_v19 }
  0x11   :  { %v1179_v56 = vld [vmem:[%s1466_s0 + $0x1f0] sm:$0xff]  ;;  %v1178_v60 = vld [vmem:[%s1466_s0 + $0x1e8] sm:$0xff]  ;;  %v1153_v63 = vld [vmem:[%s1466_s0 + $0x120] sm:$0xff]  ;;  %1183 = vset.pattern.permute.xlu1 %v1184_v19 }
  0x12   :  { %174 = vmatpush.bf16.msra.mxu0 %v1120_v22  ;;  %v1163_v57 = vld [vmem:[%s1466_s0 + $0x170] sm:$0xff]  ;;  %v1162_v61 = vld [vmem:[%s1466_s0 + $0x168] sm:$0xff]  ;;  %v1169_v0 = vld [vmem:[%s1466_s0 + $0x1a0] sm:$0xff] }
  0x13   :  { %191 = vmatpush.bf16.msra.mxu1 %v1129_v20  ;;  %341 = vmatpush.bf16.msra.mxu2 %v1136_v23  ;;  %v16_v62 = vld [vmem:[%s1467_s1 + $0x10] sm:$0x33]  ;;  %v1177_v2 = vld [vmem:[%s1466_s0 + $0x1e0] sm:$0xff]  ;;  %v1152_v5 = vld [vmem:[%s1466_s0 + $0x118] sm:$0xff] }
  0x14   :  { %358 = vmatpush.bf16.msra.mxu3 %v1145_v21  ;;  %v56_v1 = vunpack.c.l.b16 %v16_v62  ;;  %v1161_v3 = vld [vmem:[%s1466_s0 + $0x160] sm:$0xff]  ;;  %v57_v4 = vunpack.c.h.b16 %v16_v62  ;;  %v1168_v6 = vld [vmem:[%s1466_s0 + $0x198] sm:$0xff]  ;;  %v1151_v11 = vld [vmem:[%s1466_s0 + $0x110] sm:$0xff] }
  0x15   :  { %v1176_v8 = vld [vmem:[%s1466_s0 + $0x1d8] sm:$0xff]  ;;  %v1167_v12 = vld [vmem:[%s1466_s0 + $0x190] sm:$0xff]  ;;  %v1150_v15 = vld [vmem:[%s1466_s0 + $0x108] sm:$0xff] }
  0x16   :  { %175 = vmatpush.bf16.msra.mxu0 %v1119_v26  ;;  %v60_v7 = vpack.c.b16 %v56_v1, %v56_v1  ;;  %v1160_v9 = vld [vmem:[%s1466_s0 + $0x158] sm:$0xff]  ;;  %v61_v10 = vpack.c.b16 %v57_v4, %v57_v4  ;;  %v1175_v13 = vld [vmem:[%s1466_s0 + $0x1d0] sm:$0xff]  ;;  %v1166_v16 = vld [vmem:[%s1466_s0 + $0x188] sm:$0xff] }
  0x17   :  { %192 = vmatpush.bf16.msra.mxu1 %v1128_v24  ;;  %342 = vmatpush.bf16.msra.mxu2 %v1135_v27  ;;  %v1159_v14 = vld [vmem:[%s1466_s0 + $0x150] sm:$0xff]  ;;  %v716_v17 = vld [vmem:[%s1468_s2] sm:$0xff]  ;;  %v1174_v20 = vld [vmem:[%s1466_s0 + $0x1c8] sm:$0xff] }
  0x18   :  { %359 = vmatpush.bf16.msra.mxu3 %v1144_v25  ;;  %v718_v18 = vld [vmem:[%s1468_s2 + $0x10] sm:$0xf]  ;;  %v1158_v21 = vld [vmem:[%s1466_s0 + $0x148] sm:$0xff]  ;;  %721 = vperm.xlu0 %1182, %v716_v17   ;;  %v1149_v22 = vld [vmem:[%s1466_s0 + $0x100] sm:$0xff] }
  0x19   :  { %731 = vperm.xlu1 %1183, %v718_v18   ;;  %v1165_v23 = vld [vmem:[%s1466_s0 + $0x180] sm:$0xff]  ;;  %v717_v26 = vld [vmem:[%s1468_s2 + $0x8] sm:$0xff] }
  0x1a   :  { %176 = vmatpush.bf16.msra.mxu0 %v1118_v30  ;;  %v1173_v24 = vld [vmem:[%s1466_s0 + $0x1c0] sm:$0xff] }
  0x1b   :  { %193 = vmatpush.bf16.msra.mxu1 %v1127_v28  ;;  %343 = vmatpush.bf16.msra.mxu2 %v1134_v31  ;;  %v1157_v25 = vld [vmem:[%s1466_s0 + $0x140] sm:$0xff] }
  0x1c   :  { %360 = vmatpush.bf16.msra.mxu3 %v1143_v29 }
  0x1e   :  { %177 = vmatpush.bf16.msra.mxu0 %v1117_v38 }
  0x1f   :  { %194 = vmatpush.bf16.msra.mxu1 %v1126_v32  ;;  %344 = vmatpush.bf16.msra.mxu2 %v1133_v39 }
  0x20   :  { %361 = vmatpush.bf16.msra.mxu3 %v1142_v33  ;;  %726 = vperm.xlu0 %1182, %v717_v26  }
  0x21   :  { %178 = vmatmul.bf16.vlgmr.msra.gmra.mxu0 %v1339_v50 }
  0x22   :  { %507 = vmatpush.bf16.msrb.mxu0 %v1156_v42  ;;  %345 = vmatmul.bf16.vlgmr.msra.gmra.mxu2 %v1339_v50 }
  0x23   :  { %677 = vmatpush.bf16.msrb.mxu2 %v1172_v43  ;;  %195 = vmatpush.bf16.msra.mxu1 %v1125_v44 }
  0x24   :  { %362 = vmatpush.bf16.msra.mxu3 %v1141_v47 }
  0x26   :  { %819 = vmatmul.msk.bf16.vlgmr.msra.gmra.mxu1 %vm159_vm1, %v1341_v51  ;;  %508 = vmatpush.bf16.msrb.mxu0 %v1155_v54 }
  0x27   :  { %525 = vmatpush.bf16.msrb.mxu1 %v505_v53  ;;  %917 = vmatmul.msk.bf16.vlgmr.msra.gmra.mxu3 %vm159_vm1, %v1341_v51 }
  0x28   :  { %695 = vmatpush.bf16.msrb.mxu3 %v675_v52  ;;  %678 = vmatpush.bf16.msrb.mxu2 %v1171_v55 }
  0x2a   :  { %509 = vmatpush.bf16.msrb.mxu0 %v1154_v58 }
  0x2b   :  { %526 = vmatpush.bf16.msrb.mxu1 %v1163_v57 }
  0x2c   :  { %696 = vmatpush.bf16.msrb.mxu3 %v1179_v56  ;;  %679 = vmatpush.bf16.msrb.mxu2 %v1170_v59 }
  0x2e   :  { %510 = vmatpush.bf16.msrb.mxu0 %v1153_v63 }
  0x2f   :  { %527 = vmatpush.bf16.msrb.mxu1 %v1162_v61 }
  0x30   :  { %697 = vmatpush.bf16.msrb.mxu3 %v1178_v60  ;;  %680 = vmatpush.bf16.msrb.mxu2 %v1169_v0 }
  0x31   :  { %183 = vmatmul.bf16.gmra.mxu0 %v60_v7 }
  0x32   :  { %511 = vmatpush.bf16.msrb.mxu0 %v1152_v5  ;;  %350 = vmatmul.bf16.gmra.mxu2 %v60_v7 }
  0x33   :  { %528 = vmatpush.bf16.msrb.mxu1 %v1161_v3 }
  0x34   :  { %698 = vmatpush.bf16.msrb.mxu3 %v1177_v2  ;;  %681 = vmatpush.bf16.msrb.mxu2 %v1168_v6 }
  0x36   :  { %820 = vmatmul.msk.bf16.gmra.mxu1 %vm159_vm1, %v61_v10  ;;  %512 = vmatpush.bf16.msrb.mxu0 %v1151_v11 }
  0x37   :  { %529 = vmatpush.bf16.msrb.mxu1 %v1160_v9  ;;  %918 = vmatmul.msk.bf16.gmra.mxu3 %vm159_vm1, %v61_v10 }
  0x38   :  { %699 = vmatpush.bf16.msrb.mxu3 %v1176_v8  ;;  %682 = vmatpush.bf16.msrb.mxu2 %v1167_v12 }
  0x3a   :  { %513 = vmatpush.bf16.msrb.mxu0 %v1150_v15 }
  0x3b   :  { %530 = vmatpush.bf16.msrb.mxu1 %v1159_v14 }
  0x3c   :  { %700 = vmatpush.bf16.msrb.mxu3 %v1175_v13  ;;  %683 = vmatpush.bf16.msrb.mxu2 %v1166_v16 }
  0x3e   :  { %514 = vmatpush.bf16.msrb.mxu0 %v1149_v22 }
  0x3f   :  { %531 = vmatpush.bf16.msrb.mxu1 %v1158_v21 }
  0x40   :  { %701 = vmatpush.bf16.msrb.mxu3 %v1174_v20  ;;  %684 = vmatpush.bf16.msrb.mxu2 %v1165_v23 }
  0x41   :  { %515 = vmatmul.bf16.vlgmr.msrb.gmra.mxu0 %v1339_v50 }
  0x43   :  { %532 = vmatpush.bf16.msrb.mxu1 %v1157_v25  ;;  %685 = vmatmul.bf16.vlgmr.msrb.gmra.mxu2 %v1339_v50 }
  0x44   :  { %702 = vmatpush.bf16.msrb.mxu3 %v1173_v24 }
  0x46   :  { %1015 = vmatmul.msk.bf16.vlgmr.msrb.gmra.mxu1 %vm159_vm1, %v1341_v51 }
  0x47   :  { %1113 = vmatmul.msk.bf16.vlgmr.msrb.gmra.mxu3 %vm159_vm1, %v1341_v51 }
  0x51   :  { %520 = vmatmul.bf16.gmra.mxu0 %v60_v7 }
  0x53   :  { %690 = vmatmul.bf16.gmra.mxu2 %v60_v7 }
  0x56   :  { %1016 = vmatmul.msk.bf16.gmra.mxu1 %vm159_vm1, %v61_v10 }
  0x57   :  { %1114 = vmatmul.msk.bf16.gmra.mxu3 %vm159_vm1, %v61_v10 }
  0x8a   :  { %v722_v50 = vpop.permute.xlu0 %721 }
  0x8b   :  { %v732_v19 = vpop.permute.xlu1 %731 }
  0x92   :  { %v727_v5 = vpop.permute.xlu0 %726 }
  0x9e   :  { %v179_v27 = vpop.f32.mrf.mxu0 }
  0xa3   :  { %v197_v28 = vpop.f32.mrf.mxu1 }
  0xa4   :  { %v198_v46 = vadd.f32 %v197_v28, %v179_v27 }
  0xa5   :  { %v346_v29 = vpop.f32.mrf.mxu2 }
  0xa6   :  { %v181_v31 = vpop.f32.mrf.mxu0 }
  0xaa   :  { %v364_v30 = vpop.f32.mrf.mxu3 }
  0xab   :  { %v199_v32 = vpop.f32.mrf.mxu1  ;;  %v365_v45 = vadd.f32 %v364_v30, %v346_v29 }
  0xac   :  { %v200_v58 = vadd.f32 %v199_v32, %v181_v31 }
  0xad   :  { %v348_v33 = vpop.f32.mrf.mxu2  ;;  %v373_v49 = vmax.f32 %v198_v46, %v365_v45 }
  0xae   :  { %v184_v35 = vpop.f32.mrf.mxu0 }
  0xb2   :  { %v366_v34 = vpop.f32.mrf.mxu3 }
  0xb3   :  { %v202_v36 = vpop.f32.mrf.mxu1  ;;  %v367_v56 = vadd.f32 %v366_v34, %v348_v33 }
  0xb4   :  { %v203_v8 = vadd.f32 %v202_v36, %v184_v35 }
  0xb5   :  { %v351_v37 = vpop.f32.mrf.mxu2  ;;  %v374_v62 = vmax.f32 %v200_v58, %v367_v56 }
  0xb6   :  { %v186_v39 = vpop.f32.mrf.mxu0 }
  0xba   :  { %v369_v38 = vpop.f32.mrf.mxu3 }
  0xbb   :  { %v204_v40 = vpop.f32.mrf.mxu1  ;;  %v370_v6 = vadd.f32 %v369_v38, %v351_v37 }
  0xbd   :  { %v353_v41 = vpop.f32.mrf.mxu2  ;;  %v375_v12 = vmax.f32 %v203_v8, %v370_v6 }
  0xbe   :  { %v516_v43 = vpop.f32.mrf.mxu0 }
  0xc2   :  { %v371_v42 = vpop.f32.mrf.mxu3 }
  0xc3   :  { %v534_v44 = vpop.f32.mrf.mxu1 }
  0xc4   :  { %v535_v47 = vadd.f32 %v534_v44, %v516_v43 }
  0xc6   :  { %v686_v48 = vpop.f32.mrf.mxu2  ;;  %v518_v52 = vpop.f32.mrf.mxu0  ;;  %v543_v53 = vmax.f32 %v373_v49, %v535_v47 }
  0xca   :  { %v704_v51 = vpop.f32.mrf.mxu3 }
  0xcb   :  { %v705_v54 = vadd.f32 %v704_v51, %v686_v48  ;;  %v536_v55 = vpop.f32.mrf.mxu1 }
  0xcc   :  { %v537_v59 = vadd.f32 %v536_v55, %v518_v52 }
  0xcd   :  { %v713_v57 = vmax.f32 %v543_v53, %v705_v54 }
  0xce   :  { %v688_v61 = vpop.f32.mrf.mxu2  ;;  %v521_v1 = vpop.f32.mrf.mxu0  ;;  %v544_v2 = vmax.f32 %v374_v62, %v537_v59 }
  0xcf   :  { %v734_v60 = vadd.f32 %v722_v50, %v713_v57 }
  0xd1   :  { %v737_v63 = vmax.f32 %v734_v60, 0.0 }
  0xd2   :  { %v706_v0 = vpop.f32.mrf.mxu3 }
  0xd3   :  { %740 = vst [vmem:[%s1469_s3] sm:$0xff] %v737_v63  ;;  %v707_v3 = vadd.f32 %v706_v0, %v688_v61  ;;  %v539_v4 = vpop.f32.mrf.mxu1 }
  0xd4   :  { %v540_v9 = vadd.f32 %v539_v4, %v521_v1 }
  0xd5   :  { %v714_v7 = vmax.f32 %v544_v2, %v707_v3 }
  0xd6   :  { %v691_v11 = vpop.f32.mrf.mxu2  ;;  %v523_v15 = vpop.f32.mrf.mxu0  ;;  %v545_v16 = vmax.f32 %v375_v12, %v540_v9 }
  0xd7   :  { %v735_v10 = vadd.f32 %v727_v5, %v714_v7 }
  0xd9   :  { %v738_v13 = vmax.f32 %v735_v10, 0.0 }
  0xda   :  { %v709_v14 = vpop.f32.mrf.mxu3 }
  0xdb   :  { %741 = vst [vmem:[%s1469_s3 + $0x8] sm:$0xff] %v738_v13  ;;  %v710_v17 = vadd.f32 %v709_v14, %v691_v11  ;;  %v541_v18 = vpop.f32.mrf.mxu1 }
  0xdd   :  { %v715_v20 = vmax.f32 %v545_v16, %v710_v17 }
  0xde   :  { %v693_v22 = vpop.f32.mrf.mxu2 }
  0xdf   :  { %v736_v21 = vadd.f32 %v732_v19, %v715_v20 }
  0xe1   :  { %v739_v23 = vmax.f32 %v736_v21, 0.0 }
  0xe2   :  { %v711_v24 = vpop.f32.mrf.mxu3 }
  0xe3   :  { %742 = vst [vmem:[%s1469_s3 + $0x10] sm:$0xf] %v739_v23 }

// kernel: net_forward.5
= control target key start
LH: loop header
LB: loop body
LE: loop exit
PB: predicated region body
PF: predicated region fallthrough
CT: control target
= control target key end

     0   :  { %vm191_vm0 = vcmask 523264   ;;  %vm288_vm1 = vcmask 80896   ;;  %s559_s1 = inlined_call_operand.vmem [shape: bf16[320,64], index: 1, kind: input, shape index: {}]   ;;  %s560_s0 = inlined_call_operand.vmem [shape: f32[8,320], index: 0, kind: input, shape index: {}]   ;;  %s561_s2 = inlined_call_operand.vmem [shape: f32[1,64], index: 2, kind: input, shape index: {}]   ;;  %s562_s4 = inlined_call_operand.vmem [shape: f32[1,10], index: 4, kind: input, shape index: {}]   ;;  %s563_s3 = inlined_call_operand.vmem [shape: bf16[64,10], index: 3, kind: input, shape index: {}]   ;;  %s564_s5 = inlined_call_operand.vmem [shape: f32[8,10], index: 5, kind: output, shape index: {}]  }
   0x1   :  { %v411_v0 = vld [vmem:[%s559_s1 + $0x38] sm:$0xff]  ;;  %v410_v3 = vld [vmem:[%s559_s1 + $0x30] sm:$0xff]  ;;  %v409_v6 = vld [vmem:[%s559_s1 + $0x28] sm:$0xff] }
   0x2   :  { %v419_v1 = vld [vmem:[%s559_s1 + $0x78] sm:$0xff]  ;;  %195 = vmatpush.bf16.msra.mxu0 %v411_v0  ;;  %v418_v4 = vld [vmem:[%s559_s1 + $0x70] sm:$0xff]  ;;  %v417_v7 = vld [vmem:[%s559_s1 + $0x68] sm:$0xff] }
   0x3   :  { %v423_v2 = vld [vmem:[%s559_s1 + $0x98] sm:$0xff]  ;;  %208 = vmatpush.bf16.msra.mxu1 %v419_v1  ;;  %v422_v5 = vld [vmem:[%s559_s1 + $0x90] sm:$0xff]  ;;  %v421_v8 = vld [vmem:[%s559_s1 + $0x88] sm:$0xff] }
   0x4   :  { %225 = vmatpush.bf16.msra.mxu2 %v423_v2  ;;  %v408_v9 = vld [vmem:[%s559_s1 + $0x20] sm:$0xff]  ;;  %v23_v12 = vld [vmem:[%s560_s0 + $0x10] sm:$0xff]  ;;  %v407_v13 = vld [vmem:[%s559_s1 + $0x18] sm:$0xff] }
   0x5   :  { %v416_v10 = vld [vmem:[%s559_s1 + $0x60] sm:$0xff]  ;;  %v415_v14 = vld [vmem:[%s559_s1 + $0x58] sm:$0xff]  ;;  %v26_v15 = vpack.c.bf16 %v23_v12, %v23_v12  ;;  %v406_v16 = vld [vmem:[%s559_s1 + $0x10] sm:$0xff] }
   0x6   :  { %196 = vmatpush.bf16.msra.mxu0 %v410_v3  ;;  %v420_v11 = vld [vmem:[%s559_s1 + $0x80] sm:$0xff]  ;;  %v414_v17 = vld [vmem:[%s559_s1 + $0x50] sm:$0xff]  ;;  %v405_v18 = vld [vmem:[%s559_s1 + $0x8] sm:$0xff] }
   0x7   :  { %209 = vmatpush.bf16.msra.mxu1 %v418_v4  ;;  %v413_v19 = vld [vmem:[%s559_s1 + $0x48] sm:$0xff]  ;;  %v404_v20 = vld [vmem:[%s559_s1] sm:$0xff]  ;;  %v427_v26 = vld [vmem:[%s563_s3 + $0x18] sm:$0xff] }
   0x8   :  { %226 = vmatpush.bf16.msra.mxu2 %v422_v5  ;;  %v412_v21 = vld [vmem:[%s559_s1 + $0x40] sm:$0xff]  ;;  %v22_v23 = vld [vmem:[%s560_s0 + $0x8] sm:$0xff]  ;;  %279 = vmatpush.bf16.msra.mxu3 %v427_v26  ;;  %v426_v27 = vld [vmem:[%s563_s3 + $0x10] sm:$0xff] }
   0x9   :  { %v21_v22 = vld [vmem:[%s560_s0] sm:$0xff]  ;;  %v25_v25 = vpack.c.bf16 %v22_v23, %v22_v23  ;;  %v425_v28 = vld [vmem:[%s563_s3 + $0x8] sm:$0xff] }
   0xa   :  { %197 = vmatpush.bf16.msra.mxu0 %v409_v6  ;;  %v24_v24 = vpack.c.bf16 %v21_v22, %v21_v22  ;;  %v424_v29 = vld [vmem:[%s563_s3] sm:$0xff] }
   0xb   :  { %210 = vmatpush.bf16.msra.mxu1 %v417_v7  ;;  %v428_v31 = vld [vmem:[%s561_s2] ss:$0 sm:$0xff] }
   0xc   :  { %227 = vmatpush.bf16.msra.mxu2 %v421_v8  ;;  %280 = vmatpush.bf16.msra.mxu3 %v426_v27  ;;  %v429_v42 = vld [vmem:[%s562_s4] ss:$0 sm:$0xff] }
   0xe   :  { %198 = vmatpush.bf16.msra.mxu0 %v408_v9 }
   0xf   :  { %211 = vmatpush.bf16.msra.mxu1 %v416_v10 }
  0x10   :  { %228 = vmatpush.bf16.msra.mxu2 %v420_v11  ;;  %281 = vmatpush.bf16.msra.mxu3 %v425_v28 }
  0x12   :  { %199 = vmatpush.bf16.msra.mxu0 %v407_v13 }
  0x13   :  { %212 = vmatpush.bf16.msra.mxu1 %v415_v14  ;;  %386 = vmatmul.msk.bf16.vlgmr.msra.gmra.mxu2 %vm191_vm0, %v26_v15 }
  0x14   :  { %282 = vmatpush.bf16.msra.mxu3 %v424_v29 }
  0x16   :  { %200 = vmatpush.bf16.msra.mxu0 %v406_v16 }
  0x17   :  { %213 = vmatpush.bf16.msra.mxu1 %v414_v17 }
  0x1a   :  { %201 = vmatpush.bf16.msra.mxu0 %v405_v18 }
  0x1b   :  { %214 = vmatpush.bf16.msra.mxu1 %v413_v19 }
  0x1e   :  { %202 = vmatpush.bf16.msra.mxu0 %v404_v20 }
  0x1f   :  { %215 = vmatpush.bf16.msra.mxu1 %v412_v21 }
  0x21   :  { %203 = vmatmul.bf16.vlgmr.msra.gmra.mxu0 %v24_v24 }
  0x22   :  { %216 = vmatmul.bf16.vlgmr.msra.gmra.mxu1 %v25_v25 }
  0x96   :  { %v230_v30 = vpop.f32.mrf.mxu2 }
  0x9e   :  { %v204_v32 = vpop.f32.mrf.mxu0  ;;  %v232_v35 = vpop.f32.mrf.mxu2 }
  0x9f   :  { %v217_v33 = vpop.f32.mrf.mxu1  ;;  %v205_v34 = vadd.f32 %v428_v31, %v204_v32 }
  0xa1   :  { %v218_v36 = vadd.f32 %v217_v33, %v205_v34 }
  0xa3   :  { %v231_v37 = vadd.f32 %v230_v30, %v218_v36 }
  0xa5   :  { %v234_v38 = vmax.f32 %v231_v37, 0.0 }
  0xa6   :  { %v206_v39 = vpop.f32.mrf.mxu0 }
  0xa7   :  { %v219_v40 = vpop.f32.mrf.mxu1  ;;  %v235_v41 = vpack.c.bf16 %v234_v38, %v234_v38 }
  0xa9   :  { %403 = vmatmul.msk.bf16.vlgmr.msra.gmra.mxu3 %vm191_vm0, %v235_v41 }
 0x12c   :  { %v284_v43 = vpop.f32.mrf.mxu3 }
 0x12d   :  { %v285_v44 = vadd.f32 %v429_v42, %v284_v43 }
 0x12f   :  { %v289_v45 = vsel %vm288_vm1, %v285_v44, -inf }
 0x130   :  { %290 = vmax.xlane.f32.xlu0 %v289_v45 }
 0x134   :  { %v286_v46 = vpop.f32.mrf.mxu3 }
 0x1a3   :  { %v291_v47 = vpop.xlane.xlu0 %290 }
 0x1a4   :  { %v292_v48 = vsub.f32 %v285_v44, %v291_v47 }
 0x1a6   :  { %v293_v49 = vmul.f32 1.442695, %v292_v48 }
 0x1a8   :  { %430 = vpow2.f32 %v293_v49 }
 0x1ae   :  { %v431_v50 = vpop.eup %430 }
 0x1af   :  { %v295_v51 = vsel %vm288_vm1, %v431_v50, 0.0 }
 0x1b0   :  { %296 = vadd.xlane.f32.xlu0 %v295_v51 }
 0x223   :  { %v297_v52 = vpop.xlane.xlu0 %296 }
 0x224   :  { %432 = vlog2.f32 %v297_v52 }
 0x22a   :  { %v433_v53 = vpop.eup %432 }
 0x22b   :  { %v299_v54 = vmul.f32 0.6931472, %v433_v53 }
 0x22d   :  { %v300_v55 = vsub.f32 %v292_v48, %v299_v54 }
 0x22f   :  { %301 = vst.msk [vmem:[%s564_s5] sm:$0xff] %vm288_vm1, %v300_v55 }

</bundles_post_ra>
